<compile_context>
chip_gen: v7x
topology: tpu7x:2x2x1
jax: 0.10.0
libtpu: 0.0.40
codegen_flags: <defaults>
</compile_context>

<pallas_src>
import functools

import jax
import jax.numpy as jnp
from jax import lax
from jax.experimental import pallas as pl
from jax.experimental.pallas import tpu as pltpu

EPS = 1e-5  # PyTorch GroupNorm default


def _shifted(x, axis, off):
    """y[..., i, ...] = x[..., i+off, ...], zero-padded at the boundary."""
    if off == 0:
        return x
    n = x.shape[axis]
    zshape = list(x.shape)
    zshape[axis] = abs(off)
    z = jnp.zeros(zshape, x.dtype)
    if off > 0:
        body = lax.slice_in_dim(x, off, n, axis=axis)
        return jnp.concatenate([body, z], axis=axis)
    body = lax.slice_in_dim(x, 0, n + off, axis=axis)
    return jnp.concatenate([z, body], axis=axis)


def ddcm_kernel(x_ref, w_ref, gamma_ref, beta_ref, mlg_ref, mgl_ref, o_ref, *,
                D, H, W, C, num_groups):
    # x_ref:     (1, D*H, W*C)   input dtype
    # w_ref:     (W*C, 7*W*C)    bf16 packed weight
    #            columns: [b0t0 b0t1 b0t2 | b1t0 b1t1 b1t2 | b2(banded)]
    # gamma_ref: (3, W*C) f32    per-branch affine, lane-expanded
    # beta_ref:  (3, W*C) f32
    # mlg_ref:   (W*C, G) f32    lane -> group one-hot
    # mgl_ref:   (G, W*C) f32    group -> lane one-hot
    # o_ref:     (1, D*H, W*C)
    DH = D * H
    WC = W * C
    cg = C // num_groups
    denom = float(DH * W * cg)  # elements per (sample, group)

    # Single full-width MXU matmul: bf16 operands, f32 accumulation.
    xb = x_ref[0].astype(jnp.bfloat16)                                 # (DH, WC)
    P = jnp.dot(xb, w_ref[...], preferred_element_type=jnp.float32)   # (DH, 7*WC)

    gamma = gamma_ref[...]
    beta = beta_ref[...]
    mlg = mlg_ref[...]
    mgl = mgl_ref[...]

    def tap(i):  # (D, H, WC) view of tap/branch slice i of P
        return P[:, i * WC:(i + 1) * WC].reshape(D, H, WC)

    def gn_sigmoid(acc3, b):
        """GroupNorm(num_groups) + sigmoid over one branch accumulator."""
        acc = acc3.reshape(DH, WC)                                      # f32
        colsum = jnp.sum(acc, axis=0, keepdims=True)                    # (1, WC)
        mean_g = jnp.dot(colsum, mlg,
                         preferred_element_type=jnp.float32) * (1.0 / denom)  # (1, G)
        mean_l = jnp.dot(mean_g, mgl, preferred_element_type=jnp.float32)     # (1, WC)
        centered = acc - mean_l                                          # two-pass
        sqsum = jnp.sum(centered * centered, axis=0, keepdims=True)      # (1, WC)
        var_g = jnp.dot(sqsum, mlg,
                        preferred_element_type=jnp.float32) * (1.0 / denom)   # (1, G)
        inv_l = jnp.dot(lax.rsqrt(var_g + EPS), mgl,
                        preferred_element_type=jnp.float32)                   # (1, WC)
        y = centered * (inv_l * gamma[b:b + 1, :]) + beta[b:b + 1, :]
        return jax.nn.sigmoid(y)                                         # (DH, WC)

    # Branch 0: conv3x1x1 (along D) -> output-side row shift by +-1 along D.
    acc = _shifted(tap(0), 0, -1) + tap(1) + _shifted(tap(2), 0, +1)
    gate = gn_sigmoid(acc, 0)
    # Branch 1: conv1x3x1 (along H) -> output-side row shift by +-1 along H.
    acc = _shifted(tap(3), 1, -1) + tap(4) + _shifted(tap(5), 1, +1)
    gate = gate + gn_sigmoid(acc, 1)
    # Branch 2: conv1x1x3 (along W) -> already realized by the banded weight.
    gate = gate + gn_sigmoid(tap(6), 2)

    # Gate by the input (re-read the ref so no long-lived f32 copy of x).
    o_ref[0] = (gate * x_ref[0].astype(jnp.float32)).astype(o_ref.dtype)


def _pack_weights(w, W):
    """w: (3, 3, Cin, Cout) [branch, tap, Cin, Cout] -> (W*Cin, 7*W*Cout) bf16."""
    _, _, C, Co = w.shape
    eye_w = jnp.eye(W, dtype=jnp.float32)
    cols = []
    # Branches 0 (D) and 1 (H): block-diagonal replicas, one column-block per tap.
    for b in range(2):
        for k in range(3):
            cols.append(jnp.kron(eye_w, w[b, k].astype(jnp.float32)))
    # Branch 2 (W): block-banded weight -> conv along W with zero padding is a
    # single matmul, no output shifts needed.
    band = jnp.zeros((W * C, W * Co), jnp.float32)
    for k in range(3):
        band = band + jnp.kron(jnp.eye(W, k=1 - k, dtype=jnp.float32),
                               w[2, k].astype(jnp.float32))
    cols.append(band)
    return jnp.concatenate(cols, axis=1).astype(jnp.bfloat16)


def ddcm_pallas(x, w, gamma, beta, *, num_groups):
    """x: (N, D, H, W, C) NDHWC.  w: (3, 3, Cin, Cout).  gamma/beta: (3, Cout).

    Weight layout note: PyTorch Conv3d weight (Co, Cin, kD, kH, kW) maps to
    w[branch, tap] = w_torch[:, :, tap-on-its-axis].T  (i.e. (Cin, Co) per tap);
    branch 0 = conv3x1x1, 1 = conv1x3x1, 2 = conv1x1x3.
    """
    N, D, H, W, C = x.shape
    Co = w.shape[-1]
    assert w.shape == (3, 3, C, Co), "weights must be (branch, tap, Cin, Cout)"
    assert C == Co, "DDCM gate (shortcut * x) requires in_filters == out_filters"
    assert Co % num_groups == 0
    G = num_groups
    cg = Co // G
    WC = W * C

    # Pre-pack / pre-cast everything constant over the grid.
    w_big = _pack_weights(w, W)                                   # (WC, 7*WC) bf16
    gamma_l = jnp.tile(gamma.astype(jnp.float32), (1, W))         # (3, WC)
    beta_l = jnp.tile(beta.astype(jnp.float32), (1, W))           # (3, WC)
    lane_group = (jnp.arange(WC) % C) // cg
    mgl = (lane_group[None, :] == jnp.arange(G)[:, None]).astype(jnp.float32)  # (G, WC)
    mlg = mgl.T                                                    # (WC, G)

    x2 = x.reshape(N, D * H, WC)   # lane-dense view (last dim multiple of 128)

    kernel = functools.partial(ddcm_kernel, D=D, H=H, W=W, C=C, num_groups=G)
    out = pl.pallas_call(
        kernel,
        out_shape=jax.ShapeDtypeStruct((N, D * H, WC), x.dtype),
        grid=(N,),
        in_specs=[
            pl.BlockSpec((1, D * H, WC), lambda n: (n, 0, 0)),
            pl.BlockSpec((WC, 7 * WC), lambda n: (0, 0)),
            pl.BlockSpec((3, WC), lambda n: (0, 0)),
            pl.BlockSpec((3, WC), lambda n: (0, 0)),
            pl.BlockSpec((WC, G), lambda n: (0, 0)),
            pl.BlockSpec((G, WC), lambda n: (0, 0)),
        ],
        out_specs=pl.BlockSpec((1, D * H, WC), lambda n: (n, 0, 0)),
        compiler_params=pltpu.CompilerParams(
            dimension_semantics=("parallel",),
            vmem_limit_bytes=32 * 1024 * 1024,
        ),
    )(x2, w_big, gamma_l, beta_l, mlg, mgl)
    return out.reshape(N, D, H, W, Co)


# ---------------- pure-JAX reference (for verification) ----------------
def ddcm_reference(x, w, gamma, beta, *, num_groups):
    # Conv operands cast to bf16 (matching the kernel's MXU precision); all
    # normalization / sigmoid / gating math in f32.
    N, D, H, W, C = x.shape
    Co = w.shape[-1]
    axes = (1, 2, 3)  # D, H, W in NDHWC
    xf = x.astype(jnp.float32)
    gate = jnp.zeros((N, D, H, W, Co), jnp.float32)
    for b in range(3):
        acc = jnp.zeros((N, D, H, W, Co), jnp.float32)
        for k in range(3):
            xs = _shifted(xf, axes[b], k - 1).astype(jnp.bfloat16)
            acc = acc + jnp.einsum(
                "ndhwc,co->ndhwo", xs, w[b, k].astype(jnp.bfloat16),
                preferred_element_type=jnp.float32)
        cg = Co // num_groups
        g = acc.reshape(N, D, H, W, num_groups, cg)
        mean = g.mean(axis=(1, 2, 3, 5), keepdims=True)
        var = ((g - mean) ** 2).mean(axis=(1, 2, 3, 5), keepdims=True)
        normed = ((g - mean) * lax.rsqrt(var + EPS)).reshape(N, D, H, W, Co)
        y = (normed * gamma[b][None, None, None, None, :]
             + beta[b][None, None, None, None, :])
        gate = gate + jax.nn.sigmoid(y)
    return (gate * xf).astype(x.dtype)


if __name__ == "__main__":
    key = jax.random.PRNGKey(0)
    k1, k2, k3, k4 = jax.random.split(key, 4)

    # in_filters = out_filters = 16 (< 32 -> GroupNorm with 8 groups).
    # W * C = 8 * 16 = 128 -> the packed lane dim is exactly one vreg width.
    N, D, H, W, C = 2, 4, 8, 8, 16
    Co = C
    num_groups = 8

    x = jax.random.normal(k1, (N, D, H, W, C), dtype=jnp.float32)
    # Weights in kernel layout: (branch, tap, C_in, C_out).
    w = jax.random.normal(k2, (3, 3, C, Co), dtype=jnp.float32) * 0.1
    gamma = 1.0 + 0.1 * jax.random.normal(k3, (3, Co), dtype=jnp.float32)
    beta = 0.1 * jax.random.normal(k4, (3, Co), dtype=jnp.float32)

    out = ddcm_pallas(x, w, gamma, beta, num_groups=num_groups)
    out = jax.block_until_ready(out)

    ref = ddcm_reference(x, w, gamma, beta, num_groups=num_groups)
    assert out.shape == (N, D, H, W, Co)
    max_err = float(jnp.max(jnp.abs(out - ref)))
    assert jnp.allclose(out, ref, rtol=2e-3, atol=2e-3), max_err
    print("KERNEL_OK")
</pallas_src>

<mosaic_0001>
module attributes {stable_mosaic.version = 11 : i64} {
  func.func @ddcm_kernel(%arg0: i32, %arg1: memref<1x32x128xf32, #tpu.memory_space<vmem>>, %arg2: memref<128x896xbf16, #tpu.memory_space<vmem>>, %arg3: memref<3x128xf32, #tpu.memory_space<vmem>>, %arg4: memref<3x128xf32, #tpu.memory_space<vmem>>, %arg5: memref<128x8xf32, #tpu.memory_space<vmem>>, %arg6: memref<8x128xf32, #tpu.memory_space<vmem>>, %arg7: memref<1x32x128xf32, #tpu.memory_space<vmem>>) attributes {dimension_semantics = [#tpu.dimension_semantics<parallel>], iteration_bounds = array<i64: 2>, scalar_prefetch = 0 : i64, scratch_operands = 0 : i64, tpu.core_type = #tpu.core_type<tc>, window_params = [{transform_indices = @transform_0, window_bounds = array<i64: 1, 32, 128>}, {pipeline_mode = #tpu.pipeline_mode<synchronous>, transform_indices = @transform_1, window_bounds = array<i64: 128, 896>}, {pipeline_mode = #tpu.pipeline_mode<synchronous>, transform_indices = @transform_2, window_bounds = array<i64: 3, 128>}, {pipeline_mode = #tpu.pipeline_mode<synchronous>, transform_indices = @transform_3, window_bounds = array<i64: 3, 128>}, {pipeline_mode = #tpu.pipeline_mode<synchronous>, transform_indices = @transform_4, window_bounds = array<i64: 128, 8>}, {pipeline_mode = #tpu.pipeline_mode<synchronous>, transform_indices = @transform_5, window_bounds = array<i64: 8, 128>}, {transform_indices = @transform_6, window_bounds = array<i64: 1, 32, 128>}]} {
    %c0 = arith.constant 0 : index
    %c0_0 = arith.constant 0 : index
    %c0_1 = arith.constant 0 : index
    %0 = vector.load %arg1[%c0, %c0_0, %c0_1] : memref<1x32x128xf32, #tpu.memory_space<vmem>>, vector<1x32x128xf32>
    %1 = vector.shape_cast %0 : vector<1x32x128xf32> to vector<32x128xf32>
    %2 = arith.truncf %1 : vector<32x128xf32> to vector<32x128xbf16>
    %c0_2 = arith.constant 0 : index
    %c0_3 = arith.constant 0 : index
    %3 = vector.load %arg2[%c0_2, %c0_3] : memref<128x896xbf16, #tpu.memory_space<vmem>>, vector<128x896xbf16>
    %cst = arith.constant dense<0.000000e+00> : vector<32x896xf32>
    %4 = tpu.matmul %2, %3, %cst {dimension_numbers = #tpu.dot_dimension_numbers<[1], [0], [0], [1], [0, 0, 1, 1], [], []>} : vector<32x128xbf16>, vector<128x896xbf16>, vector<32x896xf32> -> vector<32x896xf32>
    %c0_4 = arith.constant 0 : index
    %c0_5 = arith.constant 0 : index
    %5 = vector.load %arg3[%c0_4, %c0_5] : memref<3x128xf32, #tpu.memory_space<vmem>>, vector<3x128xf32>
    %c0_6 = arith.constant 0 : index
    %c0_7 = arith.constant 0 : index
    %6 = vector.load %arg4[%c0_6, %c0_7] : memref<3x128xf32, #tpu.memory_space<vmem>>, vector<3x128xf32>
    %c0_8 = arith.constant 0 : index
    %c0_9 = arith.constant 0 : index
    %7 = vector.load %arg5[%c0_8, %c0_9] : memref<128x8xf32, #tpu.memory_space<vmem>>, vector<128x8xf32>
    %c0_10 = arith.constant 0 : index
    %c0_11 = arith.constant 0 : index
    %8 = vector.load %arg6[%c0_10, %c0_11] : memref<8x128xf32, #tpu.memory_space<vmem>>, vector<8x128xf32>
    %9 = vector.extract_strided_slice %4 {offsets = [0, 0], sizes = [32, 128], strides = [1, 1]} : vector<32x896xf32> to vector<32x128xf32>
    %10 = vector.shape_cast %9 : vector<32x128xf32> to vector<4x8x128xf32>
    %cst_12 = arith.constant 0.000000e+00 : f32
    %11 = vector.broadcast %cst_12 : f32 to vector<1x8x128xf32>
    %12 = vector.extract_strided_slice %10 {offsets = [0, 0, 0], sizes = [3, 8, 128], strides = [1, 1, 1]} : vector<4x8x128xf32> to vector<3x8x128xf32>
    %13 = tpu.concatenate %11, %12 in 0 : vector<1x8x128xf32>, vector<3x8x128xf32> -> vector<4x8x128xf32>
    %14 = vector.extract_strided_slice %4 {offsets = [0, 128], sizes = [32, 128], strides = [1, 1]} : vector<32x896xf32> to vector<32x128xf32>
    %15 = vector.shape_cast %14 : vector<32x128xf32> to vector<4x8x128xf32>
    %16 = arith.addf %13, %15 : vector<4x8x128xf32>
    %17 = vector.extract_strided_slice %4 {offsets = [0, 256], sizes = [32, 128], strides = [1, 1]} : vector<32x896xf32> to vector<32x128xf32>
    %18 = vector.shape_cast %17 : vector<32x128xf32> to vector<4x8x128xf32>
    %cst_13 = arith.constant 0.000000e+00 : f32
    %19 = vector.broadcast %cst_13 : f32 to vector<1x8x128xf32>
    %20 = vector.extract_strided_slice %18 {offsets = [1, 0, 0], sizes = [3, 8, 128], strides = [1, 1, 1]} : vector<4x8x128xf32> to vector<3x8x128xf32>
    %21 = tpu.concatenate %20, %19 in 0 : vector<3x8x128xf32>, vector<1x8x128xf32> -> vector<4x8x128xf32>
    %22 = arith.addf %16, %21 : vector<4x8x128xf32>
    %23 = vector.shape_cast %22 : vector<4x8x128xf32> to vector<32x128xf32>
    %cst_14 = arith.constant dense<0.000000e+00> : vector<128xf32>
    %24 = vector.multi_reduction <add>, %23, %cst_14 [0] : vector<32x128xf32> to vector<128xf32>
    %25 = vector.shape_cast %24 : vector<128xf32> to vector<1x128xf32>
    %cst_15 = arith.constant dense<0.000000e+00> : vector<1x8xf32>
    %26 = tpu.matmul %25, %7, %cst_15 {dimension_numbers = #tpu.dot_dimension_numbers<[1], [0], [0], [1], [0, 0, 1, 1], [], []>} : vector<1x128xf32>, vector<128x8xf32>, vector<1x8xf32> -> vector<1x8xf32>
    %cst_16 = arith.constant 0.001953125 : f32
    %27 = vector.broadcast %cst_16 : f32 to vector<1x8xf32>
    %28 = arith.mulf %26, %27 : vector<1x8xf32>
    %cst_17 = arith.constant dense<0.000000e+00> : vector<1x128xf32>
    %29 = tpu.matmul %28, %8, %cst_17 {dimension_numbers = #tpu.dot_dimension_numbers<[1], [0], [0], [1], [0, 0, 1, 1], [], []>} : vector<1x8xf32>, vector<8x128xf32>, vector<1x128xf32> -> vector<1x128xf32>
    %30 = vector.broadcast %29 : vector<1x128xf32> to vector<32x128xf32>
    %31 = arith.subf %23, %30 : vector<32x128xf32>
    %32 = arith.mulf %31, %31 : vector<32x128xf32>
    %cst_18 = arith.constant dense<0.000000e+00> : vector<128xf32>
    %33 = vector.multi_reduction <add>, %32, %cst_18 [0] : vector<32x128xf32> to vector<128xf32>
    %34 = vector.shape_cast %33 : vector<128xf32> to vector<1x128xf32>
    %cst_19 = arith.constant dense<0.000000e+00> : vector<1x8xf32>
    %35 = tpu.matmul %34, %7, %cst_19 {dimension_numbers = #tpu.dot_dimension_numbers<[1], [0], [0], [1], [0, 0, 1, 1], [], []>} : vector<1x128xf32>, vector<128x8xf32>, vector<1x8xf32> -> vector<1x8xf32>
    %cst_20 = arith.constant 0.001953125 : f32
    %36 = vector.broadcast %cst_20 : f32 to vector<1x8xf32>
    %37 = arith.mulf %35, %36 : vector<1x8xf32>
    %cst_21 = arith.constant 9.99999974E-6 : f32
    %38 = vector.broadcast %cst_21 : f32 to vector<1x8xf32>
    %39 = arith.addf %37, %38 : vector<1x8xf32>
    %40 = math.rsqrt %39 : vector<1x8xf32>
    %cst_22 = arith.constant dense<0.000000e+00> : vector<1x128xf32>
    %41 = tpu.matmul %40, %8, %cst_22 {dimension_numbers = #tpu.dot_dimension_numbers<[1], [0], [0], [1], [0, 0, 1, 1], [], []>} : vector<1x8xf32>, vector<8x128xf32>, vector<1x128xf32> -> vector<1x128xf32>
    %42 = vector.extract_strided_slice %5 {offsets = [0, 0], sizes = [1, 128], strides = [1, 1]} : vector<3x128xf32> to vector<1x128xf32>
    %43 = arith.mulf %41, %42 : vector<1x128xf32>
    %44 = vector.broadcast %43 : vector<1x128xf32> to vector<32x128xf32>
    %45 = arith.mulf %31, %44 : vector<32x128xf32>
    %46 = vector.extract_strided_slice %6 {offsets = [0, 0], sizes = [1, 128], strides = [1, 1]} : vector<3x128xf32> to vector<1x128xf32>
    %47 = vector.broadcast %46 : vector<1x128xf32> to vector<32x128xf32>
    %48 = arith.addf %45, %47 : vector<32x128xf32>
    %49 = arith.negf %48 : vector<32x128xf32>
    %50 = math.exp %49 : vector<32x128xf32>
    %cst_23 = arith.constant 1.000000e+00 : f32
    %51 = vector.broadcast %cst_23 : f32 to vector<32x128xf32>
    %52 = arith.addf %51, %50 : vector<32x128xf32>
    %53 = arith.divf %51, %52 : vector<32x128xf32>
    %54 = vector.extract_strided_slice %4 {offsets = [0, 384], sizes = [32, 128], strides = [1, 1]} : vector<32x896xf32> to vector<32x128xf32>
    %55 = vector.shape_cast %54 : vector<32x128xf32> to vector<4x8x128xf32>
    %cst_24 = arith.constant 0.000000e+00 : f32
    %56 = vector.broadcast %cst_24 : f32 to vector<4x1x128xf32>
    %57 = vector.extract_strided_slice %55 {offsets = [0, 0, 0], sizes = [4, 7, 128], strides = [1, 1, 1]} : vector<4x8x128xf32> to vector<4x7x128xf32>
    %58 = tpu.concatenate %56, %57 in 1 : vector<4x1x128xf32>, vector<4x7x128xf32> -> vector<4x8x128xf32>
    %59 = vector.extract_strided_slice %4 {offsets = [0, 512], sizes = [32, 128], strides = [1, 1]} : vector<32x896xf32> to vector<32x128xf32>
    %60 = vector.shape_cast %59 : vector<32x128xf32> to vector<4x8x128xf32>
    %61 = arith.addf %58, %60 : vector<4x8x128xf32>
    %62 = vector.extract_strided_slice %4 {offsets = [0, 640], sizes = [32, 128], strides = [1, 1]} : vector<32x896xf32> to vector<32x128xf32>
    %63 = vector.shape_cast %62 : vector<32x128xf32> to vector<4x8x128xf32>
    %cst_25 = arith.constant 0.000000e+00 : f32
    %64 = vector.broadcast %cst_25 : f32 to vector<4x1x128xf32>
    %65 = vector.extract_strided_slice %63 {offsets = [0, 1, 0], sizes = [4, 7, 128], strides = [1, 1, 1]} : vector<4x8x128xf32> to vector<4x7x128xf32>
    %66 = tpu.concatenate %65, %64 in 1 : vector<4x7x128xf32>, vector<4x1x128xf32> -> vector<4x8x128xf32>
    %67 = arith.addf %61, %66 : vector<4x8x128xf32>
    %68 = vector.shape_cast %67 : vector<4x8x128xf32> to vector<32x128xf32>
    %cst_26 = arith.constant dense<0.000000e+00> : vector<128xf32>
    %69 = vector.multi_reduction <add>, %68, %cst_26 [0] : vector<32x128xf32> to vector<128xf32>
    %70 = vector.shape_cast %69 : vector<128xf32> to vector<1x128xf32>
    %cst_27 = arith.constant dense<0.000000e+00> : vector<1x8xf32>
    %71 = tpu.matmul %70, %7, %cst_27 {dimension_numbers = #tpu.dot_dimension_numbers<[1], [0], [0], [1], [0, 0, 1, 1], [], []>} : vector<1x128xf32>, vector<128x8xf32>, vector<1x8xf32> -> vector<1x8xf32>
    %cst_28 = arith.constant 0.001953125 : f32
    %72 = vector.broadcast %cst_28 : f32 to vector<1x8xf32>
    %73 = arith.mulf %71, %72 : vector<1x8xf32>
    %cst_29 = arith.constant dense<0.000000e+00> : vector<1x128xf32>
    %74 = tpu.matmul %73, %8, %cst_29 {dimension_numbers = #tpu.dot_dimension_numbers<[1], [0], [0], [1], [0, 0, 1, 1], [], []>} : vector<1x8xf32>, vector<8x128xf32>, vector<1x128xf32> -> vector<1x128xf32>
    %75 = vector.broadcast %74 : vector<1x128xf32> to vector<32x128xf32>
    %76 = arith.subf %68, %75 : vector<32x128xf32>
    %77 = arith.mulf %76, %76 : vector<32x128xf32>
    %cst_30 = arith.constant dense<0.000000e+00> : vector<128xf32>
    %78 = vector.multi_reduction <add>, %77, %cst_30 [0] : vector<32x128xf32> to vector<128xf32>
    %79 = vector.shape_cast %78 : vector<128xf32> to vector<1x128xf32>
    %cst_31 = arith.constant dense<0.000000e+00> : vector<1x8xf32>
    %80 = tpu.matmul %79, %7, %cst_31 {dimension_numbers = #tpu.dot_dimension_numbers<[1], [0], [0], [1], [0, 0, 1, 1], [], []>} : vector<1x128xf32>, vector<128x8xf32>, vector<1x8xf32> -> vector<1x8xf32>
    %cst_32 = arith.constant 0.001953125 : f32
    %81 = vector.broadcast %cst_32 : f32 to vector<1x8xf32>
    %82 = arith.mulf %80, %81 : vector<1x8xf32>
    %cst_33 = arith.constant 9.99999974E-6 : f32
    %83 = vector.broadcast %cst_33 : f32 to vector<1x8xf32>
    %84 = arith.addf %82, %83 : vector<1x8xf32>
    %85 = math.rsqrt %84 : vector<1x8xf32>
    %cst_34 = arith.constant dense<0.000000e+00> : vector<1x128xf32>
    %86 = tpu.matmul %85, %8, %cst_34 {dimension_numbers = #tpu.dot_dimension_numbers<[1], [0], [0], [1], [0, 0, 1, 1], [], []>} : vector<1x8xf32>, vector<8x128xf32>, vector<1x128xf32> -> vector<1x128xf32>
    %87 = vector.extract_strided_slice %5 {offsets = [1, 0], sizes = [1, 128], strides = [1, 1]} : vector<3x128xf32> to vector<1x128xf32>
    %88 = arith.mulf %86, %87 : vector<1x128xf32>
    %89 = vector.broadcast %88 : vector<1x128xf32> to vector<32x128xf32>
    %90 = arith.mulf %76, %89 : vector<32x128xf32>
    %91 = vector.extract_strided_slice %6 {offsets = [1, 0], sizes = [1, 128], strides = [1, 1]} : vector<3x128xf32> to vector<1x128xf32>
    %92 = vector.broadcast %91 : vector<1x128xf32> to vector<32x128xf32>
    %93 = arith.addf %90, %92 : vector<32x128xf32>
    %94 = arith.negf %93 : vector<32x128xf32>
    %95 = math.exp %94 : vector<32x128xf32>
    %cst_35 = arith.constant 1.000000e+00 : f32
    %96 = vector.broadcast %cst_35 : f32 to vector<32x128xf32>
    %97 = arith.addf %96, %95 : vector<32x128xf32>
    %98 = arith.divf %96, %97 : vector<32x128xf32>
    %99 = arith.addf %53, %98 : vector<32x128xf32>
    %100 = vector.extract_strided_slice %4 {offsets = [0, 768], sizes = [32, 128], strides = [1, 1]} : vector<32x896xf32> to vector<32x128xf32>
    %101 = vector.shape_cast %100 : vector<32x128xf32> to vector<4x8x128xf32>
    %102 = vector.shape_cast %101 : vector<4x8x128xf32> to vector<32x128xf32>
    %cst_36 = arith.constant dense<0.000000e+00> : vector<128xf32>
    %103 = vector.multi_reduction <add>, %102, %cst_36 [0] : vector<32x128xf32> to vector<128xf32>
    %104 = vector.shape_cast %103 : vector<128xf32> to vector<1x128xf32>
    %cst_37 = arith.constant dense<0.000000e+00> : vector<1x8xf32>
    %105 = tpu.matmul %104, %7, %cst_37 {dimension_numbers = #tpu.dot_dimension_numbers<[1], [0], [0], [1], [0, 0, 1, 1], [], []>} : vector<1x128xf32>, vector<128x8xf32>, vector<1x8xf32> -> vector<1x8xf32>
    %cst_38 = arith.constant 0.001953125 : f32
    %106 = vector.broadcast %cst_38 : f32 to vector<1x8xf32>
    %107 = arith.mulf %105, %106 : vector<1x8xf32>
    %cst_39 = arith.constant dense<0.000000e+00> : vector<1x128xf32>
    %108 = tpu.matmul %107, %8, %cst_39 {dimension_numbers = #tpu.dot_dimension_numbers<[1], [0], [0], [1], [0, 0, 1, 1], [], []>} : vector<1x8xf32>, vector<8x128xf32>, vector<1x128xf32> -> vector<1x128xf32>
    %109 = vector.broadcast %108 : vector<1x128xf32> to vector<32x128xf32>
    %110 = arith.subf %102, %109 : vector<32x128xf32>
    %111 = arith.mulf %110, %110 : vector<32x128xf32>
    %cst_40 = arith.constant dense<0.000000e+00> : vector<128xf32>
    %112 = vector.multi_reduction <add>, %111, %cst_40 [0] : vector<32x128xf32> to vector<128xf32>
    %113 = vector.shape_cast %112 : vector<128xf32> to vector<1x128xf32>
    %cst_41 = arith.constant dense<0.000000e+00> : vector<1x8xf32>
    %114 = tpu.matmul %113, %7, %cst_41 {dimension_numbers = #tpu.dot_dimension_numbers<[1], [0], [0], [1], [0, 0, 1, 1], [], []>} : vector<1x128xf32>, vector<128x8xf32>, vector<1x8xf32> -> vector<1x8xf32>
    %cst_42 = arith.constant 0.001953125 : f32
    %115 = vector.broadcast %cst_42 : f32 to vector<1x8xf32>
    %116 = arith.mulf %114, %115 : vector<1x8xf32>
    %cst_43 = arith.constant 9.99999974E-6 : f32
    %117 = vector.broadcast %cst_43 : f32 to vector<1x8xf32>
    %118 = arith.addf %116, %117 : vector<1x8xf32>
    %119 = math.rsqrt %118 : vector<1x8xf32>
    %cst_44 = arith.constant dense<0.000000e+00> : vector<1x128xf32>
    %120 = tpu.matmul %119, %8, %cst_44 {dimension_numbers = #tpu.dot_dimension_numbers<[1], [0], [0], [1], [0, 0, 1, 1], [], []>} : vector<1x8xf32>, vector<8x128xf32>, vector<1x128xf32> -> vector<1x128xf32>
    %121 = vector.extract_strided_slice %5 {offsets = [2, 0], sizes = [1, 128], strides = [1, 1]} : vector<3x128xf32> to vector<1x128xf32>
    %122 = arith.mulf %120, %121 : vector<1x128xf32>
    %123 = vector.broadcast %122 : vector<1x128xf32> to vector<32x128xf32>
    %124 = arith.mulf %110, %123 : vector<32x128xf32>
    %125 = vector.extract_strided_slice %6 {offsets = [2, 0], sizes = [1, 128], strides = [1, 1]} : vector<3x128xf32> to vector<1x128xf32>
    %126 = vector.broadcast %125 : vector<1x128xf32> to vector<32x128xf32>
    %127 = arith.addf %124, %126 : vector<32x128xf32>
    %128 = arith.negf %127 : vector<32x128xf32>
    %129 = math.exp %128 : vector<32x128xf32>
    %cst_45 = arith.constant 1.000000e+00 : f32
    %130 = vector.broadcast %cst_45 : f32 to vector<32x128xf32>
    %131 = arith.addf %130, %129 : vector<32x128xf32>
    %132 = arith.divf %130, %131 : vector<32x128xf32>
    %133 = arith.addf %99, %132 : vector<32x128xf32>
    %c0_46 = arith.constant 0 : index
    %c0_47 = arith.constant 0 : index
    %c0_48 = arith.constant 0 : index
    %134 = vector.load %arg1[%c0_46, %c0_47, %c0_48] : memref<1x32x128xf32, #tpu.memory_space<vmem>>, vector<1x32x128xf32>
    %135 = vector.shape_cast %134 : vector<1x32x128xf32> to vector<32x128xf32>
    %136 = arith.mulf %133, %135 : vector<32x128xf32>
    %c0_49 = arith.constant 0 : index
    %c0_50 = arith.constant 0 : index
    %c0_51 = arith.constant 0 : index
    %137 = vector.load %arg7[%c0_49, %c0_50, %c0_51] : memref<1x32x128xf32, #tpu.memory_space<vmem>>, vector<1x32x128xf32>
    %138 = vector.shape_cast %137 : vector<1x32x128xf32> to vector<32x128xf32>
    %139 = vector.shape_cast %136 : vector<32x128xf32> to vector<1x32x128xf32>
    tpu.vector_store %arg7[%c0_49, %c0_50, %c0_51], %139 {strides = array<i32>} : memref<1x32x128xf32, #tpu.memory_space<vmem>>, vector<1x32x128xf32>,
    return
  }
  func.func @transform_0(%arg0: i32) -> (i32, i32, i32) {
    %c0_i32 = arith.constant 0 : i32
    %c0_i32_0 = arith.constant 0 : i32
    %c0_i32_1 = arith.constant 0 : i32
    return %arg0, %c0_i32, %c0_i32_0 : i32, i32, i32
  }
  func.func @transform_1(%arg0: i32) -> (i32, i32) {
    %c0_i32 = arith.constant 0 : i32
    %c0_i32_0 = arith.constant 0 : i32
    %c0_i32_1 = arith.constant 0 : i32
    return %c0_i32, %c0_i32_0 : i32, i32
  }
  func.func @transform_2(%arg0: i32) -> (i32, i32) {
    %c0_i32 = arith.constant 0 : i32
    %c0_i32_0 = arith.constant 0 : i32
    %c0_i32_1 = arith.constant 0 : i32
    return %c0_i32, %c0_i32_0 : i32, i32
  }
  func.func @transform_3(%arg0: i32) -> (i32, i32) {
    %c0_i32 = arith.constant 0 : i32
    %c0_i32_0 = arith.constant 0 : i32
    %c0_i32_1 = arith.constant 0 : i32
    return %c0_i32, %c0_i32_0 : i32, i32
  }
  func.func @transform_4(%arg0: i32) -> (i32, i32) {
    %c0_i32 = arith.constant 0 : i32
    %c0_i32_0 = arith.constant 0 : i32
    %c0_i32_1 = arith.constant 0 : i32
    return %c0_i32, %c0_i32_0 : i32, i32
  }
  func.func @transform_5(%arg0: i32) -> (i32, i32) {
    %c0_i32 = arith.constant 0 : i32
    %c0_i32_0 = arith.constant 0 : i32
    %c0_i32_1 = arith.constant 0 : i32
    return %c0_i32, %c0_i32_0 : i32, i32
  }
  func.func @transform_6(%arg0: i32) -> (i32, i32, i32) {
    %c0_i32 = arith.constant 0 : i32
    %c0_i32_0 = arith.constant 0 : i32
    %c0_i32_1 = arith.constant 0 : i32
    return %arg0, %c0_i32, %c0_i32_0 : i32, i32, i32
  }
}

</mosaic_0001>

<bundles_post_ra>
// kernel: tpu_custom_call.1
= control target key start
LH: loop header
LB: loop body
LE: loop exit
PB: predicated region body
PF: predicated region fallthrough
CT: control target
= control target key end

     0   :  { %11 = vsyncpa [#allocation3], 0  ;;  %s3559_s0 = inlined_call_operand.vmem [shape: f32[2,32,128], index: 0, kind: input, shape index: {}]   ;;  %s3560_s1 = inlined_call_operand.hbm [shape: bf16[128,896], index: 1, kind: input, shape index: {}]   ;;  %s3561_s2 = inlined_call_operand.vmem [shape: f32[3,128], index: 2, kind: input, shape index: {}]   ;;  %s3562_s3 = inlined_call_operand.vmem [shape: f32[3,128], index: 3, kind: input, shape index: {}]   ;;  %s3563_s4 = inlined_call_operand.vmem [shape: f32[128,8], index: 4, kind: input, shape index: {}]   ;;  %s3564_s5 = inlined_call_operand.vmem [shape: f32[8,128], index: 5, kind: input, shape index: {}]   ;;  %s3565_s6 = inlined_call_operand.hbm [shape: f32[2,32,128], index: 6, kind: output, shape index: {}]  }
   0x1   :  { %12 = vsyncpa [#allocation4], 0 }
   0x2   :  { %14 = vsyncpa [#allocation4 + $0x1], 0  ;;  %s3047_s21 = smov 0   ;;  %s3049_s22 = smov 0  }
   0x3   :  { %s3051_s23 = smov 0   ;;  %s3053_s24 = smov 0  }
   0x4 LB: > { %s3068_s25 = sadd.s32 4294967295, %s3000_s24   ;;  %s2092_s26 = sadd.s32 4294967294, %s3000_s24   ;;  %s3000_s24 = sphi %s3053_s24, %s3581_s24   ;;  %s2996_s23 = sphi %s3051_s23, %s3580_s23   ;;  %s2992_s22 = sphi %s3049_s22, %s3579_s22   ;;  %s2988_s21 = sphi %s3047_s21, %s3578_s21  }
   0x5   : > { %s3072_s27 = sadd.s32 1, %s3000_s24   ;;  %s158_s28 = sadd.s32 1, %s2996_s23 }
   0x6   : > { %s155_s29 = ssub.s32 %s3000_s24, %s3072_s27  ;;  %p168_p0 = scmp.ne.s32.totalorder %s2996_s23, %s2992_s22 }
   0x7   : > { %p156_p1 = scmp.eq.s32.totalorder %s155_s29, 0  ;;  %p169_p2 = scmp.eq.s32.totalorder %s3068_s25, 1 }
   0x8   : > { %p174_p3 = scmp.ne.s32.totalorder %s2992_s22, %s2988_s21  ;;  %p175_p4 = scmp.eq.s32.totalorder %s2092_s26, 1 }
   0x9   : > { %s3083_s30 = scalar_select %p156_p1, %s2996_s23, %s158_s28  }
   0xa   : > { %p3085_p5 = por %p169_p2, %p168_p0  ;;  %p3089_p6 = por %p175_p4, %p174_p3 }
   0xb   : > { %p2093_p7 = scmp.ge.s32.totalorder %s3000_s24, 1  ;;  %p182_p8 = scmp.lt.s32.totalorder %s3000_s24, 3 }
   0xc   : > { %s3569_s7 = scalar_select %p3085_p5, 1, 0 }
   0xd   : > { %s3570_s8 = scalar_select %p3089_p6, 1, 0 }
   0xe   : > { %p3566_p9 = scmp.eq.s32.totalorder %s3068_s25, 0  ;;  %p3096_p10 = pnand %p2093_p7, %p182_p8 }
   0xf   : > { %s3002_s10 = smov [#allocation2]   ;;  %s2906_s15 = scalar_lea.hbm %s3560_s1, 7168 }
  0x10   : > { %s3571_s9 = scalar_select %p3096_p10, 1, 0 }
  0x11   : > { %s194_s11 = sshll.u32 %s3002_s10, 4  ;;  %p2716_p11 = pneg %p3096_p10  ;;  %s195_s11 = int_to_ptr.vmem [resolvable:$true] %s194_s11 }
  0x12   : > { %p2907_p13 = scmp.ne.s32.totalorder %s3560_s1, %s2906_s15  ;;  %p2913_p3 = scmp.lt.u32.totalorder %s2906_s15, %s3560_s1 }
  0x13   : > { %p3104_p12 = pnand %p3566_p9, %p2716_p11 }
  0x15   : > { %p2908_p0 = pneg %p3104_p12 }
  0x17   : > { %p2909_p1 = pnand %p2908_p0, %p2907_p13 }
  0x19   : > { %p2910_p2 = pneg %p2909_p1 }
  0x1b   : > { %p2915_p4 = pnand %p2913_p3, %p2910_p2 }
  0x1d   : > { %2918 = shalt.err (!%p2915_p4)
}
  0x1e   : > { %s2919_s20 = scalar_lea.vmem %s195_s11, 7168  ;;  %p2927_p9 = scmp.lt.s32.totalorder %s195_s11, %s195_s11 }
  0x1f   : > { %p2920_p7 = scmp.ne.s32.totalorder %s195_s11, %s2919_s20  ;;  %p2928_p6 = scmp.lt.s32.totalorder %s2919_s20, %s2919_s20 }
  0x21   : > { %p2922_p8 = pnand %p2920_p7, %p2908_p0  ;;  %p2929_p5 = por %p2928_p6, %p2927_p9 }
  0x23   : > { %p2923_p11 = pneg %p2922_p8 }
  0x25   : > { %p2930_p10 = pnand %p2929_p5, %p2923_p11 }
  0x27   : > { %2933 = shalt.err (!%p2930_p10)
}
  0x28   : > { %s3003_s26 = smov 448   ;;  %s3004_s28 = smov 28  }
  0x29   : > { %2719 = dma.hbm_to_vmem [thread:$0]  (!%p3104_p12), %s3560_s1, 7168, %s195_s11, [#allocation3], %s3003_s26, %s3003_s26, %s3004_s28  }
  0x2a   : > { %p3573_p13 = scmp.ne.s32.totalorder %s3571_s9, 0 }
  0x2b   : > { %p3574_p1 = scmp.eq.s32.totalorder (!%p3573_p13), %s3068_s25, 0 }
  0x2c   : > { %230 = sbr.rel (%p3573_p13) target bundleno = 2690 (0xa82), region = 44 }
  0x33   : > { %2979 = dma.done.wait (%p3574_p1), [#allocation3], 7168   ;;  %p3575_p0 = pmov %p3574_p1 }
  0x34   : > { %v3005_v0 = vmov 0   ;;  %v2768_v1 = vld [vmem:[#allocation2 + $0x4] ss:$28 sps:$4 sm:$0xff]   ;;  %v2770_v2 = vld [vmem:[#allocation2 + $0xc] ss:$28 sps:$4 sm:$0xff]   ;;  %p260_p5 = scmp.lt.s32.totalorder %s3068_s25, 1 }
  0x35   : > { %2981 = vsyncadd (%p3575_p0), [#allocation3], 4294960128  ;;  %656 = vmatprep.mubr.bf16.mxu0 %v3005_v0  ;;  %708 = vmatprep.mubr.bf16.mxu1 %v3005_v0  ;;  %v2772_v3 = vld [vmem:[#allocation2] ss:$28 sps:$4 sm:$0xff]   ;;  %v2773_v4 = vld [vmem:[#allocation2 + $0x8] ss:$28 sps:$4 sm:$0xff]  }
  0x36   : > { %624 = vmatprep.subr.bf16.mxu0 %v2768_v1  ;;  %676 = vmatprep.subr.bf16.mxu1 %v2770_v2  ;;  %v2774_v5 = vld [vmem:[#allocation2 + $0x3c] ss:$28 sps:$4 sm:$0xff]   ;;  %v2776_v6 = vld [vmem:[#allocation2 + $0x44] ss:$28 sps:$4 sm:$0xff]   ;;  %v2780_v9 = vld [vmem:[#allocation2 + $0x74] ss:$28 sps:$4 sm:$0xff]  }
  0x37   : > { %625 = vmatpush1.bf16.msra.mxu0 %v2772_v3  ;;  %677 = vmatpush1.bf16.msra.mxu1 %v2773_v4  ;;  %v2778_v7 = vld [vmem:[#allocation2 + $0x38] ss:$28 sps:$4 sm:$0xff]   ;;  %v2779_v8 = vld [vmem:[#allocation2 + $0x40] ss:$28 sps:$4 sm:$0xff]   ;;  %v2784_v11 = vld [vmem:[#allocation2 + $0x70] ss:$28 sps:$4 sm:$0xff]  }
  0x38   : > { %626 = vmatprep.subr.bf16.mxu0 %v2774_v5  ;;  %678 = vmatprep.subr.bf16.mxu1 %v2776_v6  ;;  %v2782_v10 = vld [vmem:[#allocation2 + $0x7c] ss:$28 sps:$4 sm:$0xff]   ;;  %v2786_v13 = vld [vmem:[#allocation2 + $0xac] ss:$28 sps:$4 sm:$0xff]   ;;  %v2788_v14 = vld [vmem:[#allocation2 + $0xb4] ss:$28 sps:$4 sm:$0xff]  }
  0x39   : > { %v2785_v12 = vld [vmem:[#allocation2 + $0x78] ss:$28 sps:$4 sm:$0xff]   ;;  %v2790_v15 = vld [vmem:[#allocation2 + $0xa8] ss:$28 sps:$4 sm:$0xff]   ;;  %v2791_v16 = vld [vmem:[#allocation2 + $0xb0] ss:$28 sps:$4 sm:$0xff]  }
  0x3a   : > { %v2792_v17 = vld [vmem:[#allocation2 + $0xe4] ss:$28 sps:$4 sm:$0xff]   ;;  %v2794_v18 = vld [vmem:[#allocation2 + $0xec] ss:$28 sps:$4 sm:$0xff]   ;;  %v2798_v21 = vld [vmem:[#allocation2 + $0x11c] ss:$28 sps:$4 sm:$0xff]  }
  0x3b   : > { %627 = vmatpush1.bf16.msra.mxu0 %v2778_v7  ;;  %679 = vmatpush1.bf16.msra.mxu1 %v2779_v8  ;;  %v2796_v19 = vld [vmem:[#allocation2 + $0xe0] ss:$28 sps:$4 sm:$0xff]   ;;  %v2797_v20 = vld [vmem:[#allocation2 + $0xe8] ss:$28 sps:$4 sm:$0xff]   ;;  %s261_s9 = scalar_select %p260_p5, %s3068_s25, 1  ;;  %v3006_v58 = vmov 0.0|0.0  }
  0x3c   : > { %628 = vmatprep.subr.bf16.mxu0 %v2780_v9  ;;  %680 = vmatprep.subr.bf16.mxu1 %v2782_v10  ;;  %v2800_v22 = vld [vmem:[#allocation2 + $0x124] ss:$28 sps:$4 sm:$0xff]   ;;  %v2802_v23 = vld [vmem:[#allocation2 + $0x118] ss:$28 sps:$4 sm:$0xff]   ;;  %v2808_v27 = vld [vmem:[#allocation2 + $0x150] ss:$28 sps:$4 sm:$0xff]  }
  0x3d   : > { %v2803_v24 = vld [vmem:[#allocation2 + $0x120] ss:$28 sps:$4 sm:$0xff]   ;;  %v2804_v25 = vld [vmem:[#allocation2 + $0x154] ss:$28 sps:$4 sm:$0xff]   ;;  %s2180_s11 = sshll.u32 %s261_s9, 5  ;;  %v833_v56 = vld [vmem:[%s3563_s4 + $0x8] sm:$0xff] }
  0x3e   : > { %v2806_v26 = vld [vmem:[#allocation2 + $0x15c] ss:$28 sps:$4 sm:$0xff]   ;;  %v2810_v29 = vld [vmem:[#allocation2 + $0x18c] ss:$28 sps:$4 sm:$0xff]   ;;  %s3137_s14 = scalar_lea.vmem %s3559_s0, %s2180_s11  ;;  %v2812_v30 = vld [vmem:[#allocation2 + $0x194] ss:$28 sps:$4 sm:$0xff]  }
  0x3f   : > { %629 = vmatpush1.bf16.msra.mxu0 %v2784_v11  ;;  %681 = vmatpush1.bf16.msra.mxu1 %v2785_v12  ;;  %v2809_v28 = vld [vmem:[#allocation2 + $0x158] ss:$28 sps:$4 sm:$0xff]   ;;  %v2814_v31 = vld [vmem:[#allocation2 + $0x188] ss:$28 sps:$4 sm:$0xff]   ;;  %v2815_v32 = vld [vmem:[#allocation2 + $0x190] ss:$28 sps:$4 sm:$0xff]  }
  0x40   : > { %630 = vmatprep.subr.bf16.mxu0 %v2786_v13  ;;  %682 = vmatprep.subr.bf16.mxu1 %v2788_v14  ;;  %v266_v33 = vld [vmem:[%s3137_s14] sm:$0xff]  ;;  %v267_v34 = vld [vmem:[%s3137_s14 + $0x8] sm:$0xff]  ;;  %v2818_v35 = vld [vmem:[#allocation2 + $0x14] ss:$28 sps:$4 sm:$0xff]   ;;  %vm3007_vm0 = vmmov 0   ;;  %vm1231_vm1 = vcmask 1040384  }
  0x41   : > { %v270_v36 = vpack.c.bf16 %v267_v34, %v266_v33  ;;  %v2816_v37 = vld [vmem:[#allocation2 + $0x10] ss:$28 sps:$4 sm:$0xff]   ;;  %v2819_v39 = vld [vmem:[#allocation2 + $0x48] ss:$28 sps:$4 sm:$0xff]   ;;  %v269_v41 = vld [vmem:[%s3137_s14 + $0x18] sm:$0xff]  ;;  %vm1252_vm2 = vcmask 1046528  }
  0x42   : > { %v2821_v38 = vld [vmem:[#allocation2 + $0x4c] ss:$28 sps:$4 sm:$0xff]   ;;  %v268_v40 = vld [vmem:[%s3137_s14 + $0x10] sm:$0xff]  ;;  %v2824_v42 = vld [vmem:[#allocation2 + $0x84] ss:$28 sps:$4 sm:$0xff]   ;;  %vm937_vm3 = vcmask 64512  }
  0x43   : > { %631 = vmatpush1.bf16.msra.mxu0 %v2790_v15  ;;  %683 = vmatpush1.bf16.msra.mxu1 %v2791_v16  ;;  %v3145_v43 = vpack.c.bf16 %v269_v41, %v268_v40  ;;  %v2822_v44 = vld [vmem:[#allocation2 + $0x80] ss:$28 sps:$4 sm:$0xff]   ;;  %v2825_v46 = vld [vmem:[#allocation2 + $0xb8] ss:$28 sps:$4 sm:$0xff]   ;;  %v2828_v48 = vld [vmem:[#allocation2 + $0xf0] ss:$28 sps:$4 sm:$0xff]  }
  0x44   : > { %632 = vmatprep.subr.bf16.mxu0 %v2792_v17  ;;  %684 = vmatprep.subr.bf16.mxu1 %v2794_v18  ;;  %v2827_v45 = vld [vmem:[#allocation2 + $0xbc] ss:$28 sps:$4 sm:$0xff]   ;;  %v2830_v47 = vld [vmem:[#allocation2 + $0xf4] ss:$28 sps:$4 sm:$0xff]   ;;  %v2833_v49 = vld [vmem:[#allocation2 + $0x12c] ss:$28 sps:$4 sm:$0xff]  }
  0x45   : > { %v2831_v50 = vld [vmem:[#allocation2 + $0x128] ss:$28 sps:$4 sm:$0xff]   ;;  %v2834_v52 = vld [vmem:[#allocation2 + $0x160] ss:$28 sps:$4 sm:$0xff]   ;;  %v2837_v54 = vld [vmem:[#allocation2 + $0x198] ss:$28 sps:$4 sm:$0xff]  }
  0x46   : > { %v2836_v51 = vld [vmem:[#allocation2 + $0x164] ss:$28 sps:$4 sm:$0xff]   ;;  %v2839_v53 = vld [vmem:[#allocation2 + $0x19c] ss:$28 sps:$4 sm:$0xff]   ;;  %v834_v59 = vld [vmem:[%s3563_s4 + $0x10] sm:$0xff]  ;;  %v3008_v16 = vmov 0.0  }
  0x47   : > { %633 = vmatpush1.bf16.msra.mxu0 %v2796_v19  ;;  %685 = vmatpush1.bf16.msra.mxu1 %v2797_v20  ;;  %v832_v55 = vld [vmem:[%s3563_s4] sm:$0xff]  ;;  %v835_v60 = vld [vmem:[%s3563_s4 + $0x18] sm:$0xff]  ;;  %v837_v63 = vld [vmem:[%s3563_s4 + $0x28] sm:$0xff]  ;;  %s257_s9 = sand.u32 1, %s2992_s22   ;;  %s2181_s12 = sshll.u32 %s3068_s25, 9 }
  0x48   : > { %634 = vmatprep.subr.bf16.mxu0 %v2798_v21  ;;  %686 = vmatprep.subr.bf16.mxu1 %v2800_v22  ;;  %v3156_v57 = vpack.c.bf16 %v833_v56, %v832_v55  ;;  %v3169_v61 = vpack.c.bf16 %v835_v60, %v834_v59  ;;  %v836_v62 = vld [vmem:[%s3563_s4 + $0x20] sm:$0xff]  ;;  %v838_v1 = vld [vmem:[%s3563_s4 + $0x30] sm:$0xff]  ;;  %v839_v2 = vld [vmem:[%s3563_s4 + $0x38] sm:$0xff]  ;;  %s2098_s11 = sshll.u32 %s257_s9, 5  ;;  %s3513_s18 = scalar_lea.hbm %s3565_s6, %s2181_s12 }
  0x49   : > { %v3189_v3 = vpack.c.bf16 %v839_v2, %v838_v1  ;;  %v840_v4 = vld [vmem:[%s3563_s4 + $0x40] sm:$0xff]  ;;  %v841_v5 = vld [vmem:[%s3563_s4 + $0x48] sm:$0xff]  ;;  %v842_v7 = vld [vmem:[%s3563_s4 + $0x50] sm:$0xff]  ;;  %s259_s13 = scalar_lea.vmem [#allocation5], %s2098_s11  ;;  %s3518_s25 = scalar_lea.sflag [#allocation4], %s257_s9 }
  0x4a   : > { %v3199_v6 = vpack.c.bf16 %v841_v5, %v840_v4  ;;  %v843_v8 = vld [vmem:[%s3563_s4 + $0x58] sm:$0xff]  ;;  %v844_v10 = vld [vmem:[%s3563_s4 + $0x60] sm:$0xff]  ;;  %v845_v11 = vld [vmem:[%s3563_s4 + $0x68] sm:$0xff]  ;;  %s2018_s15 = sshll.u32 %s259_s13, 4  ;;  %p3576_p9 = scmp.ne.s32.totalorder %s3569_s7, 0  ;;  %s3515_s15 = int_to_ptr.vmem [resolvable:$true] %s2018_s15 }
  0x4b   : > { %635 = vmatpush1.bf16.msra.mxu0 %v2802_v23  ;;  %687 = vmatpush1.bf16.msra.mxu1 %v2803_v24  ;;  %v3209_v9 = vpack.c.bf16 %v843_v8, %v842_v7  ;;  %v3219_v12 = vpack.c.bf16 %v845_v11, %v844_v10  ;;  %v846_v13 = vld [vmem:[%s3563_s4 + $0x70] sm:$0xff]  ;;  %v847_v14 = vld [vmem:[%s3563_s4 + $0x78] sm:$0xff]  ;;  %v2842_v19 = vld [vmem:[#allocation2 + $0x88] ss:$28 sps:$4 sm:$0xff]   ;;  %s2934_s19 = scalar_lea.vmem %s3515_s15, 512  ;;  %s3009_s20 = smov [#allocation5]  }
  0x4c   : > { %636 = vmatprep.subr.bf16.mxu0 %v2804_v25  ;;  %688 = vmatprep.subr.bf16.mxu1 %v2806_v26  ;;  %v3229_v15 = vpack.c.bf16 %v847_v14, %v846_v13  ;;  %v2840_v17 = vld [vmem:[#allocation2 + $0x18] ss:$28 sps:$4 sm:$0xff]   ;;  %v2841_v18 = vld [vmem:[#allocation2 + $0x50] ss:$28 sps:$4 sm:$0xff]   ;;  %v2843_v20 = vld [vmem:[#allocation2 + $0xc0] ss:$28 sps:$4 sm:$0xff]   ;;  %p2935_p6 = scmp.ne.s32.totalorder %s3515_s15, %s2934_s19 }
  0x4d   : > { %v2844_v21 = vld [vmem:[#allocation2 + $0xf8] ss:$28 sps:$4 sm:$0xff]   ;;  %v2845_v22 = vld [vmem:[#allocation2 + $0x130] ss:$28 sps:$4 sm:$0xff]   ;;  %v2846_v23 = vld [vmem:[#allocation2 + $0x168] ss:$28 sps:$4 sm:$0xff]  }
  0x4e   : > { %v2847_v24 = vld [vmem:[#allocation2 + $0x1a0] ss:$28 sps:$4 sm:$0xff]   ;;  %p2936_p10 = pnand %p2935_p6, %p3576_p9  ;;  %s2938_s26 = sshll.u32 %s3009_s20, 4  ;;  %s2939_s26 = int_to_ptr.vmem [resolvable:$false] %s2938_s26 }
  0x4f   : > { %637 = vmatpush1.bf16.msra.mxu0 %v2808_v27  ;;  %689 = vmatpush1.bf16.msra.mxu1 %v2809_v28  ;;  %v3239_v25 = vld [vmem:[%s3564_s5] sm:$0xff]  ;;  %s2940_s28 = scalar_lea.vmem %s2939_s26, 1024  ;;  %p2941_p2 = scmp.lt.s32.totalorder %s3515_s15, %s2939_s26 }
  0x50   : > { %638 = vmatprep.subr.bf16.mxu0 %v2810_v29  ;;  %690 = vmatprep.subr.bf16.mxu1 %v2812_v30  ;;  %p2937_p12 = pneg %p2936_p10  ;;  %p2942_p3 = scmp.lt.s32.totalorder %s2940_s28, %s2934_s19 }
  0x52   : > { %p2943_p4 = por %p2942_p3, %p2941_p2 }
  0x53   : > { %639 = vmatpush1.bf16.msra.mxu0 %v2814_v31  ;;  %691 = vmatpush1.bf16.msra.mxu1 %v2815_v32 }
  0x54   : > { %728 = vmatprep.subr.bf16.mxu0 %v2818_v35  ;;  %2306 = vmatprep.subr.bf16.mxu1 %v2840_v17  ;;  %p2944_p7 = pnand %p2943_p4, %p2937_p12 }
  0x56   : > { %657 = vmatmul.mubr.bf16.vlgmr.msra.gmra.mrb[0].mxu0 %v270_v36  ;;  %709 = vmatmul.mubr.bf16.vlgmr.msra.gmra.mrb[0].mxu1 %v270_v36 }
  0x57   : > { %729 = vmatpush1.bf16.msra.mxu0 %v2816_v37  ;;  %666 = vmatprep.mubr.bf16.mxu0 %v3005_v0 }
  0x58   : > { %730 = vmatprep.subr.bf16.mxu0 %v2821_v38  ;;  %717 = vmatprep.mubr.bf16.mxu1 %v3005_v0 }
  0x59   : > { %2307 = vmatpush3.bf16.msra.mxu1 %v2840_v17 }
  0x5a   : > { %2308 = vmatprep.subr.bf16.mxu1 %v2841_v18 }
  0x5b   : > { %731 = vmatpush1.bf16.msra.mxu0 %v2819_v39 }
  0x5c   : > { %732 = vmatprep.subr.bf16.mxu0 %v2824_v42 }
  0x5d   : > { %2309 = vmatpush3.bf16.msra.mxu1 %v2841_v18 }
  0x5e   : > { %667 = vmatmul.mubr.bf16.gmra.mrb[4].mxu0 %v3145_v43  ;;  %718 = vmatmul.mubr.bf16.gmra.mrb[4].mxu1 %v3145_v43 }
  0x5f   : > { %733 = vmatpush1.bf16.msra.mxu0 %v2822_v44  ;;  %760 = vmatprep.mubr.bf16.mxu0 %v3005_v0 }
  0x60   : > { %734 = vmatprep.subr.bf16.mxu0 %v2827_v45  ;;  %2322 = vmatprep.mubr.bf16.mxu1 %v270_v36 }
  0x61   : > { %2310 = vmatprep.subr.bf16.mxu1 %v2842_v19 }
  0x62   : > { %2311 = vmatpush3.bf16.msra.mxu1 %v2842_v19 }
  0x63   : > { %735 = vmatpush1.bf16.msra.mxu0 %v2825_v46  ;;  %2312 = vmatprep.subr.bf16.mxu1 %v2843_v20 }
  0x64   : > { %736 = vmatprep.subr.bf16.mxu0 %v2830_v47 }
  0x66   : > { %2313 = vmatpush3.bf16.msra.mxu1 %v2843_v20 }
  0x67   : > { %737 = vmatpush1.bf16.msra.mxu0 %v2828_v48  ;;  %2314 = vmatprep.subr.bf16.mxu1 %v2844_v21 }
  0x68   : > { %738 = vmatprep.subr.bf16.mxu0 %v2833_v49 }
  0x6a   : > { %2315 = vmatpush3.bf16.msra.mxu1 %v2844_v21 }
  0x6b   : > { %739 = vmatpush1.bf16.msra.mxu0 %v2831_v50  ;;  %2316 = vmatprep.subr.bf16.mxu1 %v2845_v22 }
  0x6c   : > { %740 = vmatprep.subr.bf16.mxu0 %v2836_v51 }
  0x6e   : > { %2317 = vmatpush3.bf16.msra.mxu1 %v2845_v22 }
  0x6f   : > { %741 = vmatpush1.bf16.msra.mxu0 %v2834_v52  ;;  %2318 = vmatprep.subr.bf16.mxu1 %v2846_v23 }
  0x70   : > { %742 = vmatprep.subr.bf16.mxu0 %v2839_v53 }
  0x72   : > { %2319 = vmatpush3.bf16.msra.mxu1 %v2846_v23 }
  0x73   : > { %743 = vmatpush1.bf16.msra.mxu0 %v2837_v54  ;;  %2320 = vmatprep.subr.bf16.mxu1 %v2847_v24 }
  0x74   : > { %2566 = vmatprep.subr.bf16.mxu0 %v3006_v58 }
  0x76   : > { %761 = vmatmul.mubr.bf16.vlgmr.msra.gmra.mrb[8].mxu0 %v270_v36  ;;  %2321 = vmatpush3.bf16.msra.mxu1 %v2847_v24 }
  0x77   : > { %770 = vmatprep.mubr.bf16.mxu0 %v3005_v0  ;;  %2568 = vmatpush3.bf16.msra.mxu0 %v3156_v57  ;;  %v3179_v0 = vpack.c.bf16 %v837_v63, %v836_v62 }
  0x78   : > { %2569 = vmatprep.subr.bf16.mxu0 %v3006_v58  ;;  %2361 = vmatprep.subr.mxu1 %v3008_v16 }
  0x79   : > { %2323 = vmatmul.mubr.bf16.vlgmr.msra.gmra.mrb[8].mxu1 %v3145_v43 }
  0x7a   : > { %2362 = vmatpush3.msra.mxu1 %v3239_v25  ;;  %2363 = vmatprep.mubr.msk.f32.mxu1 %vm3007_vm0, %v3008_v16 }
  0x7b   : > { %2571 = vmatpush3.bf16.msra.mxu0 %v3169_v61  ;;  %2590 = vmatprep.subr.bf16.mxu1 %v3006_v58 }
  0x7c   : > { %2572 = vmatprep.subr.bf16.mxu0 %v3006_v58 }
  0x7e   : > { %771 = vmatmul.mubr.bf16.gmra.mrb[12].mxu0 %v3145_v43 }
  0x7f   : > { %2574 = vmatpush3.bf16.msra.mxu0 %v3179_v0  ;;  %2358 = vmatprep.mubr.msk.f32.mxu0 %vm3007_vm0, %v3008_v16 }
  0x80   : > { %2575 = vmatprep.subr.bf16.mxu0 %v3006_v58 }
  0x83   : > { %2577 = vmatpush3.bf16.msra.mxu0 %v3189_v3 }
  0x84   : > { %2578 = vmatprep.subr.bf16.mxu0 %v3006_v58 }
  0x87   : > { %2580 = vmatpush3.bf16.msra.mxu0 %v3199_v6 }
  0x88   : > { %2581 = vmatprep.subr.bf16.mxu0 %v3006_v58 }
  0x8b   : > { %2583 = vmatpush3.bf16.msra.mxu0 %v3209_v9 }
  0x8c   : > { %2584 = vmatprep.subr.bf16.mxu0 %v3006_v58 }
  0x8f   : > { %2586 = vmatpush3.bf16.msra.mxu0 %v3219_v12 }
  0x90   : > { %2587 = vmatprep.subr.bf16.mxu0 %v3006_v58 }
  0x93   : > { %2589 = vmatpush3.bf16.msra.mxu0 %v3229_v15 }
  0x94   : > { %2401 = vmatprep.subr.mxu0 %v3008_v16 }
 0x129   : > { %v658_v26 = vpop.f32.mrb[0].mxu0  ;;  %v710_v27 = vpop.f32.mrb[0].mxu1 }
 0x12a   : > { %v660_v28 = vpop.f32.mrb[1].mxu0  ;;  %v711_v29 = vpop.f32.mrb[1].mxu1 }
 0x12b   : > { %v662_v30 = vpop.f32.mrb[2].mxu0  ;;  %v713_v31 = vpop.f32.mrb[2].mxu1  ;;  %v1223_v56 = vrot.slane %v711_v29, 7 }
 0x12c   : > { %v3246_v32 = vadd.f32 %v713_v31, %v660_v28  ;;  %v664_v33 = vpop.f32.mrb[3].mxu0  ;;  %v715_v34 = vpop.f32.mrb[3].mxu1 }
 0x12d   : > { %v850_v35 = vadd.f32 %v664_v33, %v658_v26  ;;  %v1224_v60 = vrot.slane %v715_v34, 7  ;;  %v1232_v63 = vsel %vm1231_vm1, 0.0, %v1223_v56 }
 0x12f   : > { %v1233_v7 = vsel %vm1231_vm1, 0.0, %v1224_v60 }
 0x131   : > { %v668_v36 = vpop.f32.mrb[4].mxu0  ;;  %v719_v37 = vpop.f32.mrb[4].mxu1 }
 0x132   : > { %v3248_v38 = vadd.f32 %v850_v35, %v719_v37  ;;  %v670_v39 = vpop.f32.mrb[5].mxu0  ;;  %v721_v40 = vpop.f32.mrb[5].mxu1 }
 0x133   : > { %v851_v41 = vadd.f32 %v670_v39, %v662_v30  ;;  %v672_v42 = vpop.f32.mrb[6].mxu0  ;;  %v723_v43 = vpop.f32.mrb[6].mxu1  ;;  %v1225_v11 = vrot.slane %v721_v40, 7 }
 0x134   : > { %v857_v44 = vadd.f32 %v3248_v38, %v3246_v32  ;;  %v673_v45 = vpop.f32.mrb[7].mxu0  ;;  %v725_v46 = vpop.f32.mrb[7].mxu1 }
 0x135   : > { %v3252_v47 = vadd.f32 %v851_v41, %v723_v43  ;;  %v3254_v48 = vadd.f32 %v673_v45, %v668_v36  ;;  %v1226_v18 = vrot.slane %v725_v46, 7  ;;  %v1234_v22 = vsel %vm1231_vm1, 0.0, %v1225_v11 }
 0x137   : > { %v858_v49 = vadd.f32 %v857_v44, %v3252_v47  ;;  %v1235_v28 = vsel %vm1231_vm1, 0.0, %v1226_v18 }
 0x139   : > { %v859_v50 = vadd.f32 %v858_v49, %v3254_v48 }
 0x13b   : > { %v860_v51 = vrot.slane %v859_v50, 4 }
 0x13d   : > { %v861_v52 = vadd.f32 %v860_v51, %v859_v50  ;;  %v1011_v50 = vlaneseq }
 0x13f   : > { %v862_v53 = vrot.slane %v861_v52, 2  ;;  %v3311_v51 = vshrl.u32 %v1011_v50, 7 }
 0x141   : > { %v863_v54 = vadd.f32 %v862_v53, %v861_v52  ;;  %v3314_v52 = vsub.s32 0, %v3311_v51 }
 0x143   : > { %v864_v55 = vrot.slane %v863_v54, 1 }
 0x145   : > { %v865_v59 = vadd.f32 %v864_v55, %v863_v54 }
 0x147   : > { %2359 = vmatmul.mubr.f32.vlgmr.msra.gmra.mrb[16].mxu0 %v865_v59 }
 0x148   : > { %2402 = vmatpush3.msra.mxu0 %v3239_v25  ;;  %2403 = vmatprep.mubr.msk.f32.mxu0 %vm3007_vm0, %v3008_v16 }
 0x149   : > { %v762_v62 = vpop.f32.mrb[8].mxu0  ;;  %2614 = vmatprep.subr.bf16.mxu0 %v3006_v58 }
 0x14a   : > { %v1236_v1 = vadd.f32 %v1232_v63, %v762_v62  ;;  %v764_v2 = vpop.f32.mrb[9].mxu0 }
 0x14b   : > { %v1244_v4 = vrot.slane %v764_v2, 1  ;;  %v766_v5 = vpop.f32.mrb[10].mxu0 }
 0x14c   : > { %v1237_v8 = vadd.f32 %v1233_v7, %v766_v5  ;;  %v768_v10 = vpop.f32.mrb[11].mxu0  ;;  %v3278_v37 = vpop.f32.mrb[8].mxu1 }
 0x14d   : > { %v1253_v13 = vsel %vm1252_vm2, %v1244_v4, 0.0  ;;  %v1245_v14 = vrot.slane %v768_v10, 1  ;;  %v3280_v39 = vpop.f32.mrb[9].mxu1 }
 0x14e   : > { %v3265_v17 = vadd.f32 %v1253_v13, %v1236_v1  ;;  %v3282_v40 = vpop.f32.mrb[10].mxu1 }
 0x14f   : > { %v1254_v19 = vsel %vm1252_vm2, %v1245_v14, 0.0  ;;  %v3284_v41 = vpop.f32.mrb[11].mxu1 }
 0x150   : > { %v3268_v20 = vadd.f32 %v1254_v19, %v1237_v8  ;;  %v1629_v42 = vadd.f32 %v3284_v41, %v3280_v39 }
 0x151   : > { %v772_v21 = vpop.f32.mrb[12].mxu0 }
 0x152   : > { %v1238_v23 = vadd.f32 %v1234_v22, %v772_v21  ;;  %v774_v24 = vpop.f32.mrb[13].mxu0  ;;  %v1630_v43 = vadd.f32 %v3278_v37, %v1629_v42  ;;  %v1261_v22 = vadd.f32 %v3268_v20, %v3265_v17 }
 0x153   : > { %v1246_v26 = vrot.slane %v774_v24, 1  ;;  %v776_v27 = vpop.f32.mrb[14].mxu0 }
 0x154   : > { %v1239_v29 = vadd.f32 %v1235_v28, %v776_v27  ;;  %v778_v30 = vpop.f32.mrb[15].mxu0  ;;  %v3290_v44 = vadd.f32 %v3282_v40, %v1630_v43 }
 0x155   : > { %v1255_v31 = vsel %vm1252_vm2, %v1246_v26, 0.0  ;;  %v1247_v33 = vrot.slane %v778_v30, 1 }
 0x156   : > { %v3273_v34 = vadd.f32 %v1255_v31, %v1238_v23 }
 0x157   : > { %v1256_v35 = vsel %vm1252_vm2, %v1247_v33, 0.0 }
 0x158   : > { %v3276_v36 = vadd.f32 %v1256_v35, %v1239_v29  ;;  %v1262_v23 = vadd.f32 %v1261_v22, %v3273_v34 }
 0x15a   : > { %v1263_v24 = vadd.f32 %v1262_v23, %v3276_v36 }
 0x15c   : > { %v1264_v26 = vrot.slane %v1263_v24, 4 }
 0x15e   : > { %v1265_v27 = vadd.f32 %v1264_v26, %v1263_v24  ;;  %v3441_v24 = vld [vmem:[%s3561_s2] sm:$0x7] }
 0x160   : > { %v1266_v28 = vrot.slane %v1265_v27, 2 }
 0x162   : > { %v1267_v29 = vadd.f32 %v1266_v28, %v1265_v27  ;;  %v3449_v28 = vld [vmem:[%s3562_s3] sm:$0x7] }
 0x164   : > { %v1268_v30 = vrot.slane %v1267_v29, 1 }
 0x166   : > { %v1269_v31 = vadd.f32 %v1268_v30, %v1267_v29  ;;  %v1190_v29 = vrot.slane %v3449_v28, %v3314_v52 }
 0x21a   : > { %v932_v45 = vpop.f32.mrb[16].mxu0 }
 0x21b   : > { %v936_v46 = vmul.f32 0.001953125, %v932_v45  ;;  %v2360_v49 = vpop.f32.mrb[17].mxu0 }
 0x21d   : > { %2364 = vmatmul.mubr.msk.f32.vlgmr.msra.gmra.mrb[12].mxu1 %vm937_vm3, %v936_v46 }
 0x21e   : > { %2592 = vmatpush3.bf16.msra.mxu1 %v3156_v57  ;;  %2398 = vmatprep.mubr.msk.f32.mxu1 %vm3007_vm0, %v3008_v16 }
 0x21f   : > { %2593 = vmatprep.subr.bf16.mxu1 %v3006_v58 }
 0x222   : > { %2595 = vmatpush3.bf16.msra.mxu1 %v3169_v61 }
 0x223   : > { %2596 = vmatprep.subr.bf16.mxu1 %v3006_v58 }
 0x226   : > { %2598 = vmatpush3.bf16.msra.mxu1 %v3179_v0 }
 0x227   : > { %2599 = vmatprep.subr.bf16.mxu1 %v3006_v58 }
 0x22a   : > { %2601 = vmatpush3.bf16.msra.mxu1 %v3189_v3 }
 0x22b   : > { %2602 = vmatprep.subr.bf16.mxu1 %v3006_v58 }
 0x22e   : > { %2604 = vmatpush3.bf16.msra.mxu1 %v3199_v6 }
 0x22f   : > { %2605 = vmatprep.subr.bf16.mxu1 %v3006_v58 }
 0x232   : > { %2607 = vmatpush3.bf16.msra.mxu1 %v3209_v9 }
 0x233   : > { %2608 = vmatprep.subr.bf16.mxu1 %v3006_v58 }
 0x236   : > { %2610 = vmatpush3.bf16.msra.mxu1 %v3219_v12 }
 0x237   : > { %2611 = vmatprep.subr.bf16.mxu1 %v3006_v58 }
 0x23a   : > { %2613 = vmatpush3.bf16.msra.mxu1 %v3229_v15 }
 0x23b   : > { %2441 = vmatprep.subr.mxu1 %v3008_v16 }
 0x2f0   : > { %v1007_v53 = vpop.f32.mrb[12].mxu1 }
 0x2f1   : > { %v1014_v54 = vrot.slane %v1007_v53, %v3314_v52  ;;  %v2365_v55 = vpop.f32.mrb[13].mxu1 }
 0x2f3   : > { %v3318_v56 = vsub.f32 %v3246_v32, %v1014_v54  ;;  %v3321_v59 = vsub.f32 %v3248_v38, %v1014_v54  ;;  %v3324_v60 = vsub.f32 %v3252_v47, %v1014_v54  ;;  %v3327_v62 = vsub.f32 %v3254_v48, %v1014_v54 }
 0x2f5   : > { %v1019_v63 = vmul.f32 %v3318_v56, %v3318_v56  ;;  %v1020_v1 = vmul.f32 %v3321_v59, %v3321_v59  ;;  %v1021_v2 = vmul.f32 %v3324_v60, %v3324_v60  ;;  %v1022_v38 = vmul.f32 %v3327_v62, %v3327_v62 }
 0x2f7   : > { %v1023_v32 = vadd.f32 %v1020_v1, %v1019_v63 }
 0x2f9   : > { %v1024_v4 = vadd.f32 %v1023_v32, %v1021_v2 }
 0x2fb   : > { %v1025_v5 = vadd.f32 %v1024_v4, %v1022_v38 }
 0x2fd   : > { %v1026_v47 = vrot.slane %v1025_v5, 4 }
 0x2ff   : > { %v1027_v7 = vadd.f32 %v1026_v47, %v1025_v5 }
 0x301   : > { %v1028_v8 = vrot.slane %v1027_v7, 2 }
 0x303   : > { %v1029_v48 = vadd.f32 %v1028_v8, %v1027_v7 }
 0x305   : > { %v1030_v10 = vrot.slane %v1029_v48, 1 }
 0x307   : > { %v1031_v11 = vadd.f32 %v1030_v10, %v1029_v48 }
 0x309   : > { %2399 = vmatmul.mubr.f32.vlgmr.msra.gmra.mrb[14].mxu1 %v1031_v11 }
 0x30a   : > { %2442 = vmatpush3.msra.mxu1 %v3239_v25  ;;  %2443 = vmatprep.mubr.msk.f32.mxu1 %vm3007_vm0, %v3008_v16 }
 0x30b   : > { %2638 = vmatprep.subr.bf16.mxu1 %v3006_v58 }
 0x3dc   : > { %v1098_v13 = vpop.f32.mrb[14].mxu1 }
 0x3dd   : > { %v1102_v14 = vmul.f32 0.001953125, %v1098_v13  ;;  %v2400_v18 = vpop.f32.mrb[15].mxu1 }
 0x3de   : > { %v1632_v18 = vrot.slane %v3290_v44, 4 }
 0x3df   : > { %v1103_v19 = vadd.f32 1e-05, %v1102_v14 }
 0x3e1   : > { %2848 = vrsqrt.f32 %v1103_v19  ;;  %v1633_v19 = vadd.f32 %v1632_v18, %v3290_v44 }
 0x3eb   : > { %v2849_v21 = vpop.eup %2848 }
 0x3ec   : > { %2404 = vmatmul.mubr.msk.f32.vlgmr.msra.gmra.mrb[18].mxu0 %vm937_vm3, %v2849_v21  ;;  %v1634_v21 = vrot.slane %v1633_v19, 2 }
 0x3ed   : > { %2616 = vmatpush3.bf16.msra.mxu0 %v3156_v57  ;;  %2438 = vmatprep.mubr.msk.f32.mxu0 %vm3007_vm0, %v3008_v16 }
 0x3ee   : > { %2617 = vmatprep.subr.bf16.mxu0 %v3006_v58  ;;  %v1635_v22 = vadd.f32 %v1634_v21, %v1633_v19 }
 0x3f0   : > { %v1636_v23 = vrot.slane %v1635_v22, 1 }
 0x3f1   : > { %2619 = vmatpush3.bf16.msra.mxu0 %v3169_v61 }
 0x3f2   : > { %2620 = vmatprep.subr.bf16.mxu0 %v3006_v58  ;;  %v1637_v44 = vadd.f32 %v1636_v23, %v1635_v22 }
 0x3f5   : > { %2622 = vmatpush3.bf16.msra.mxu0 %v3179_v0 }
 0x3f6   : > { %2623 = vmatprep.subr.bf16.mxu0 %v3006_v58 }
 0x3f9   : > { %2625 = vmatpush3.bf16.msra.mxu0 %v3189_v3 }
 0x3fa   : > { %2626 = vmatprep.subr.bf16.mxu0 %v3006_v58 }
 0x3fd   : > { %2628 = vmatpush3.bf16.msra.mxu0 %v3199_v6 }
 0x3fe   : > { %2629 = vmatprep.subr.bf16.mxu0 %v3006_v58 }
 0x401   : > { %2631 = vmatpush3.bf16.msra.mxu0 %v3209_v9 }
 0x402   : > { %2632 = vmatprep.subr.bf16.mxu0 %v3006_v58 }
 0x405   : > { %2634 = vmatpush3.bf16.msra.mxu0 %v3219_v12 }
 0x406   : > { %2635 = vmatprep.subr.bf16.mxu0 %v3006_v58 }
 0x409   : > { %2637 = vmatpush3.bf16.msra.mxu0 %v3229_v15 }
 0x40a   : > { %2481 = vmatprep.subr.mxu0 %v3008_v16 }
 0x40c   : > { %2439 = vmatmul.mubr.f32.vlgmr.msra.gmra.mrb[20].mxu0 %v1269_v31 }
 0x40d   : > { %2482 = vmatpush3.msra.mxu0 %v3239_v25  ;;  %2483 = vmatprep.mubr.msk.f32.mxu0 %vm3007_vm0, %v3008_v16 }
 0x40e   : > { %2662 = vmatprep.subr.bf16.mxu0 %v3006_v58 }
 0x4bf   : > { %v3368_v33 = vpop.f32.mrb[18].mxu0 }
 0x4c0   : > { %v2405_v35 = vpop.f32.mrb[19].mxu0  ;;  %v1178_v26 = vmul.f32 %v3368_v33, %v3441_v24 }
 0x4c2   : > { %v1182_v27 = vrot.slane %v1178_v26, %v3314_v52 }
 0x4c4   : > { %v1184_v30 = vmul.f32 %v1182_v27, %v3321_v59  ;;  %v1185_v31 = vmul.f32 %v1182_v27, %v3324_v60  ;;  %v1186_v35 = vmul.f32 %v1182_v27, %v3327_v62 }
 0x4c6   : > { %v1192_v33 = vadd.f32 %v1190_v29, %v1184_v30 }
 0x4df   : > { %v1336_v42 = vpop.f32.mrb[20].mxu0 }
 0x4e0   : > { %v1340_v43 = vmul.f32 0.001953125, %v1336_v42  ;;  %v2440_v45 = vpop.f32.mrb[21].mxu0 }
 0x4e1   : > { %v1582_v45 = vrot.slane %v3441_v24, 1 }
 0x4e2   : > { %2444 = vmatmul.mubr.msk.f32.vlgmr.msra.gmra.mrb[16].mxu1 %vm937_vm3, %v1340_v43  ;;  %v1193_v43 = vadd.f32 %v1190_v29, %v1185_v31 }
 0x4e3   : > { %2640 = vmatpush3.bf16.msra.mxu1 %v3156_v57  ;;  %2478 = vmatprep.mubr.msk.f32.mxu1 %vm3007_vm0, %v3008_v16 }
 0x4e4   : > { %2641 = vmatprep.subr.bf16.mxu1 %v3006_v58 }
 0x4e7   : > { %2643 = vmatpush3.bf16.msra.mxu1 %v3169_v61 }
 0x4e8   : > { %2644 = vmatprep.subr.bf16.mxu1 %v3006_v58 }
 0x4eb   : > { %2646 = vmatpush3.bf16.msra.mxu1 %v3179_v0 }
 0x4ec   : > { %2647 = vmatprep.subr.bf16.mxu1 %v3006_v58 }
 0x4ef   : > { %2649 = vmatpush3.bf16.msra.mxu1 %v3189_v3 }
 0x4f0   : > { %2650 = vmatprep.subr.bf16.mxu1 %v3006_v58 }
 0x4f3   : > { %2652 = vmatpush3.bf16.msra.mxu1 %v3199_v6 }
 0x4f4   : > { %2653 = vmatprep.subr.bf16.mxu1 %v3006_v58 }
 0x4f7   : > { %2655 = vmatpush3.bf16.msra.mxu1 %v3209_v9 }
 0x4f8   : > { %2656 = vmatprep.subr.bf16.mxu1 %v3006_v58 }
 0x4fb   : > { %2658 = vmatpush3.bf16.msra.mxu1 %v3219_v12 }
 0x4fc   : > { %2659 = vmatprep.subr.bf16.mxu1 %v3006_v58 }
 0x4ff   : > { %2661 = vmatpush3.bf16.msra.mxu1 %v3229_v15 }
 0x500   : > { %2521 = vmatprep.subr.mxu1 %v3008_v16 }
 0x5b5   : > { %v1410_v46 = vpop.f32.mrb[16].mxu1 }
 0x5b6   : > { %v1417_v49 = vrot.slane %v1410_v46, %v3314_v52  ;;  %v2445_v50 = vpop.f32.mrb[17].mxu1  ;;  %v1194_v46 = vadd.f32 %v1190_v29, %v1186_v35 }
 0x5b7   : > { %v2160_v50 = vmul.f32 -1.442695, %v1192_v33 }
 0x5b8   : > { %v3391_v53 = vsub.f32 %v3265_v17, %v1417_v49  ;;  %v3394_v54 = vsub.f32 %v3268_v20, %v1417_v49  ;;  %v3397_v55 = vsub.f32 %v3273_v34, %v1417_v49  ;;  %v3400_v63 = vsub.f32 %v3276_v36, %v1417_v49 }
 0x5b9   : > { %v2162_v59 = vmul.f32 -1.442695, %v1194_v46 }
 0x5ba   : > { %v1422_v1 = vmul.f32 %v3391_v53, %v3391_v53  ;;  %v1423_v2 = vmul.f32 %v3394_v54, %v3394_v54  ;;  %v1424_v32 = vmul.f32 %v3397_v55, %v3397_v55  ;;  %v1425_v20 = vmul.f32 %v3400_v63, %v3400_v63 }
 0x5bc   : > { %v1426_v17 = vadd.f32 %v1423_v2, %v1422_v1  ;;  %v1595_v1 = vsub.s32 1, %v3311_v51 }
 0x5be   : > { %v1427_v38 = vadd.f32 %v1426_v17, %v1424_v32  ;;  %v1596_v62 = vrot.slane %v3449_v28, %v1595_v1 }
 0x5c0   : > { %v1428_v4 = vadd.f32 %v1427_v38, %v1425_v20 }
 0x5c2   : > { %v1429_v34 = vrot.slane %v1428_v4, 4 }
 0x5c4   : > { %v1430_v5 = vadd.f32 %v1429_v34, %v1428_v4 }
 0x5c6   : > { %v1431_v47 = vrot.slane %v1430_v5, 2 }
 0x5c8   : > { %v1432_v36 = vadd.f32 %v1431_v47, %v1430_v5 }
 0x5ca   : > { %v1433_v7 = vrot.slane %v1432_v36, 1 }
 0x5cc   : > { %v1434_v8 = vadd.f32 %v1433_v7, %v1432_v36 }
 0x5ce   : > { %2479 = vmatmul.mubr.f32.vlgmr.msra.gmra.mrb[18].mxu1 %v1434_v8 }
 0x5cf   : > { %2522 = vmatpush3.msra.mxu1 %v3239_v25  ;;  %2523 = vmatprep.mubr.msk.f32.mxu1 %vm3007_vm0, %v3008_v16 }
 0x5d0   : > { %2686 = vmatprep.subr.bf16.mxu1 %v3006_v58 }
 0x6a1   : > { %v1501_v48 = vpop.f32.mrb[18].mxu1 }
 0x6a2   : > { %v1505_v10 = vmul.f32 0.001953125, %v1501_v48  ;;  %v2480_v11 = vpop.f32.mrb[19].mxu1 }
 0x6a4   : > { %v1506_v13 = vadd.f32 1e-05, %v1505_v10 }
 0x6a6   : > { %2850 = vrsqrt.f32 %v1506_v13 }
 0x6b0   : > { %v2851_v14 = vpop.eup %2850 }
 0x6b1   : > { %2484 = vmatmul.mubr.msk.f32.vlgmr.msra.gmra.mrb[22].mxu0 %vm937_vm3, %v2851_v14 }
 0x6b2   : > { %2664 = vmatpush3.bf16.msra.mxu0 %v3156_v57  ;;  %2518 = vmatprep.mubr.msk.f32.mxu0 %vm3007_vm0, %v3008_v16 }
 0x6b3   : > { %2665 = vmatprep.subr.bf16.mxu0 %v3006_v58 }
 0x6b6   : > { %2667 = vmatpush3.bf16.msra.mxu0 %v3169_v61 }
 0x6b7   : > { %2668 = vmatprep.subr.bf16.mxu0 %v3006_v58 }
 0x6ba   : > { %2670 = vmatpush3.bf16.msra.mxu0 %v3179_v0 }
 0x6bb   : > { %2671 = vmatprep.subr.bf16.mxu0 %v3006_v58 }
 0x6be   : > { %2673 = vmatpush3.bf16.msra.mxu0 %v3189_v3 }
 0x6bf   : > { %2674 = vmatprep.subr.bf16.mxu0 %v3006_v58 }
 0x6c2   : > { %2676 = vmatpush3.bf16.msra.mxu0 %v3199_v6 }
 0x6c3   : > { %2677 = vmatprep.subr.bf16.mxu0 %v3006_v58 }
 0x6c6   : > { %2679 = vmatpush3.bf16.msra.mxu0 %v3209_v9 }
 0x6c7   : > { %2680 = vmatprep.subr.bf16.mxu0 %v3006_v58 }
 0x6ca   : > { %2682 = vmatpush3.bf16.msra.mxu0 %v3219_v12 }
 0x6cb   : > { %2683 = vmatprep.subr.bf16.mxu0 %v3006_v58 }
 0x6ce   : > { %2685 = vmatpush3.bf16.msra.mxu0 %v3229_v15 }
 0x6cf   : > { %2561 = vmatprep.subr.mxu0 %v3008_v16 }
 0x6d1   : > { %2519 = vmatmul.mubr.f32.vlgmr.msra.gmra.mrb[24].mxu0 %v1637_v44 }
 0x6d2   : > { %2562 = vmatpush3.msra.mxu0 %v3239_v25  ;;  %2563 = vmatprep.mubr.msk.f32.mxu0 %vm3007_vm0, %v3008_v16  ;;  %v1183_v25 = vmul.f32 %v1182_v27, %v3318_v56  ;;  %v2161_v56 = vmul.f32 -1.442695, %v1193_v43 }
 0x6d4   : > { %v1191_v42 = vadd.f32 %v1190_v29, %v1183_v25 }
 0x6d6   : > { %v2159_v49 = vmul.f32 -1.442695, %v1191_v42 }
 0x6d8   : > { %2852 = vpow2.f32 %v2159_v49 }
 0x6d9   : > { %2854 = vpow2.f32 %v2160_v50 }
 0x6da   : > { %2856 = vpow2.f32 %v2161_v56 }
 0x6db   : > { %2858 = vpow2.f32 %v2162_v59 }
 0x6e2   : > { %v2853_v13 = vpop.eup %2852 }
 0x6e3   : > { %v2855_v14 = vpop.eup %2854 }
 0x6e4   : > { %v1208_v18 = vadd.f32 1.0, %v2855_v14 }
 0x784   : > { %v1577_v2 = vpop.f32.mrb[22].mxu0 }
 0x785   : > { %v1584_v32 = vmul.f32 %v1582_v45, %v1577_v2  ;;  %v2485_v17 = vpop.f32.mrb[23].mxu0 }
 0x787   : > { %v1588_v60 = vrot.slane %v1584_v32, %v3314_v52 }
 0x789   : > { %v1589_v20 = vmul.f32 %v1588_v60, %v3391_v53  ;;  %v1590_v38 = vmul.f32 %v1588_v60, %v3394_v54  ;;  %v1591_v4 = vmul.f32 %v1588_v60, %v3397_v55  ;;  %v1592_v34 = vmul.f32 %v1588_v60, %v3400_v63  ;;  %v2857_v53 = vpop.eup %2856 }
 0x78a   : > { %v2859_v54 = vpop.eup %2858  ;;  %v1207_v55 = vadd.f32 1.0, %v2853_v13  ;;  %v1209_v63 = vadd.f32 1.0, %v2857_v53 }
 0x78b   : > { %v1597_v5 = vadd.f32 %v1596_v62, %v1589_v20  ;;  %v1598_v47 = vadd.f32 %v1596_v62, %v1590_v38  ;;  %v1599_v36 = vadd.f32 %v1596_v62, %v1591_v4  ;;  %v1600_v7 = vadd.f32 %v1596_v62, %v1592_v34 }
 0x78c   : > { %v1210_v19 = vadd.f32 1.0, %v2859_v54 }
 0x78d   : > { %v2165_v8 = vmul.f32 -1.442695, %v1597_v5  ;;  %v2166_v48 = vmul.f32 -1.442695, %v1598_v47  ;;  %v2167_v10 = vmul.f32 -1.442695, %v1599_v36 }
 0x78e   : > { %v2168_v11 = vmul.f32 -1.442695, %v1600_v7 }
 0x78f   : > { %2860 = vpow2.f32 %v2165_v8  ;;  %v1949_v8 = vrot.slane %v3441_v24, 2 }
 0x790   : > { %2862 = vpow2.f32 %v2166_v48  ;;  %v1962_v48 = vsub.s32 2, %v3311_v51 }
 0x791   : > { %2864 = vpow2.f32 %v2167_v10 }
 0x792   : > { %2866 = vpow2.f32 %v2168_v11  ;;  %v1963_v53 = vrot.slane %v3449_v28, %v1962_v48 }
 0x793   : > { %2868 = vrcp.f32 %v1207_v55 }
 0x794   : > { %2870 = vrcp.f32 %v1208_v18 }
 0x795   : > { %2872 = vrcp.f32 %v1209_v63 }
 0x796   : > { %2874 = vrcp.f32 %v1210_v19 }
 0x799   : > { %v2861_v21 = vpop.eup %2860 }
 0x79a   : > { %v2863_v22 = vpop.eup %2862  ;;  %v1613_v23 = vadd.f32 1.0, %v2861_v21 }
 0x79b   : > { %v2865_v44 = vpop.eup %2864  ;;  %v1614_v26 = vadd.f32 1.0, %v2863_v22 }
 0x79c   : > { %v2867_v27 = vpop.eup %2866  ;;  %v1615_v25 = vadd.f32 1.0, %v2865_v44  ;;  %2876 = vrcp.f32 %v1613_v23 }
 0x79d   : > { %v1616_v29 = vadd.f32 1.0, %v2867_v27  ;;  %2878 = vrcp.f32 %v1614_v26  ;;  %v2869_v30 = vpop.eup %2868 }
 0x79e   : > { %2880 = vrcp.f32 %v1615_v25  ;;  %v2871_v31 = vpop.eup %2870 }
 0x79f   : > { %2882 = vrcp.f32 %v1616_v29  ;;  %v2873_v35 = vpop.eup %2872 }
 0x7a0   : > { %v2875_v33 = vpop.eup %2874 }
 0x7a4   : > { %v1704_v42 = vpop.f32.mrb[24].mxu0 }
 0x7a5   : > { %v1708_v43 = vmul.f32 0.001953125, %v1704_v42  ;;  %v2520_v45 = vpop.f32.mrb[25].mxu0 }
 0x7a6   : > { %v2877_v46 = vpop.eup %2876 }
 0x7a7   : > { %v2879_v49 = vpop.eup %2878  ;;  %v3465_v50 = vadd.f32 %v2877_v46, %v2869_v30  ;;  %2524 = vmatmul.mubr.msk.f32.vlgmr.msra.gmra.mrb[20].mxu1 %vm937_vm3, %v1708_v43 }
 0x7a8   : > { %v2881_v1 = vpop.eup %2880  ;;  %v3468_v56 = vadd.f32 %v2879_v49, %v2871_v31  ;;  %2688 = vmatpush3.bf16.msra.mxu1 %v3156_v57  ;;  %2558 = vmatprep.mubr.msk.f32.mxu1 %vm3007_vm0, %v3008_v16 }
 0x7a9   : > { %v2883_v2 = vpop.eup %2882  ;;  %v3473_v32 = vadd.f32 %v2881_v1, %v2873_v35  ;;  %2689 = vmatprep.subr.bf16.mxu1 %v3006_v58 }
 0x7aa   : > { %v3476_v17 = vadd.f32 %v2883_v2, %v2875_v33  ;;  %v2902_v2 = vld [vmem:[%s3137_s14] sm:$0xff] }
 0x7ac   : > { %2691 = vmatpush3.bf16.msra.mxu1 %v3169_v61 }
 0x7ad   : > { %2692 = vmatprep.subr.bf16.mxu1 %v3006_v58 }
 0x7b0   : > { %2694 = vmatpush3.bf16.msra.mxu1 %v3179_v0 }
 0x7b1   : > { %2695 = vmatprep.subr.bf16.mxu1 %v3006_v58 }
 0x7b4   : > { %2697 = vmatpush3.bf16.msra.mxu1 %v3189_v3 }
 0x7b5   : > { %2698 = vmatprep.subr.bf16.mxu1 %v3006_v58 }
 0x7b8   : > { %2700 = vmatpush3.bf16.msra.mxu1 %v3199_v6 }
 0x7b9   : > { %2701 = vmatprep.subr.bf16.mxu1 %v3006_v58 }
 0x7bc   : > { %2703 = vmatpush3.bf16.msra.mxu1 %v3209_v9 }
 0x7bd   : > { %2704 = vmatprep.subr.bf16.mxu1 %v3006_v58 }
 0x7c0   : > { %2706 = vmatpush3.bf16.msra.mxu1 %v3219_v12 }
 0x7c1   : > { %2707 = vmatprep.subr.bf16.mxu1 %v3006_v58 }
 0x7c4   : > { %2709 = vmatpush3.bf16.msra.mxu1 %v3229_v15 }
 0x87a   : > { %v1778_v57 = vpop.f32.mrb[20].mxu1 }
 0x87b   : > { %v1785_v61 = vrot.slane %v1778_v57, %v3314_v52  ;;  %v2525_v0 = vpop.f32.mrb[21].mxu1 }
 0x87c   : > { %v2903_v0 = vld [vmem:[%s3137_s14 + $0x8] sm:$0xff] }
 0x87d   : > { %v1786_v3 = vsub.f32 %v3280_v39, %v1785_v61  ;;  %v1787_v6 = vsub.f32 %v3284_v41, %v1785_v61  ;;  %v1788_v16 = vsub.f32 %v3278_v37, %v1785_v61  ;;  %v1789_v9 = vsub.f32 %v3282_v40, %v1785_v61 }
 0x87f   : > { %v1790_v59 = vmul.f32 %v1786_v3, %v1786_v3  ;;  %v1791_v60 = vmul.f32 %v1787_v6, %v1787_v6  ;;  %v1792_v62 = vmul.f32 %v1788_v16, %v1788_v16  ;;  %v1793_v20 = vmul.f32 %v1789_v9, %v1789_v9 }
 0x881   : > { %v1794_v12 = vadd.f32 %v1791_v60, %v1790_v59 }
 0x883   : > { %v1795_v58 = vadd.f32 %v1794_v12, %v1792_v62 }
 0x885   : > { %v1796_v38 = vadd.f32 %v1795_v58, %v1793_v20 }
 0x887   : > { %v1797_v15 = vrot.slane %v1796_v38, 4 }
 0x889   : > { %v1798_v4 = vadd.f32 %v1797_v15, %v1796_v38 }
 0x88b   : > { %v1799_v34 = vrot.slane %v1798_v4, 2 }
 0x88d   : > { %v1800_v5 = vadd.f32 %v1799_v34, %v1798_v4 }
 0x88f   : > { %v1801_v47 = vrot.slane %v1800_v5, 1 }
 0x891   : > { %v1802_v36 = vadd.f32 %v1801_v47, %v1800_v5 }
 0x893   : > { %2559 = vmatmul.mubr.f32.vlgmr.msra.gmra.mrb[22].mxu1 %v1802_v36 }
 0x966   : > { %v1869_v39 = vpop.f32.mrb[22].mxu1 }
 0x967   : > { %v1873_v41 = vmul.f32 0.001953125, %v1869_v39  ;;  %v2560_v7 = vpop.f32.mrb[23].mxu1 }
 0x969   : > { %v1874_v37 = vadd.f32 1e-05, %v1873_v41 }
 0x96b   : > { %2884 = vrsqrt.f32 %v1874_v37 }
 0x975   : > { %v2885_v40 = vpop.eup %2884 }
 0x976   : > { %2564 = vmatmul.mubr.msk.f32.vlgmr.msra.gmra.mrb[26].mxu0 %vm937_vm3, %v2885_v40 }
 0xa49   : > { %v1945_v10 = vpop.f32.mrb[26].mxu0 }
 0xa4a   : > { %v1951_v11 = vmul.f32 %v1949_v8, %v1945_v10  ;;  %v2565_v13 = vpop.f32.mrb[27].mxu0 }
 0xa4c   : > { %v1955_v14 = vrot.slane %v1951_v11, %v3314_v52 }
 0xa4e   : > { %v1956_v54 = vmul.f32 %v1955_v14, %v1786_v3  ;;  %v1957_v55 = vmul.f32 %v1955_v14, %v1787_v6  ;;  %v1958_v18 = vmul.f32 %v1955_v14, %v1788_v16  ;;  %v1959_v63 = vmul.f32 %v1955_v14, %v1789_v9  ;;  %v2904_v6 = vld [vmem:[%s3137_s14 + $0x10] sm:$0xff] }
 0xa50   : > { %v1964_v19 = vadd.f32 %v1963_v53, %v1956_v54  ;;  %v1965_v21 = vadd.f32 %v1963_v53, %v1957_v55  ;;  %v1966_v22 = vadd.f32 %v1963_v53, %v1958_v18  ;;  %v1967_v23 = vadd.f32 %v1963_v53, %v1959_v63 }
 0xa52   : > { %v2171_v44 = vmul.f32 -1.442695, %v1964_v19  ;;  %v2172_v26 = vmul.f32 -1.442695, %v1965_v21  ;;  %v2173_v24 = vmul.f32 -1.442695, %v1966_v22 }
 0xa53   : > { %v2174_v27 = vmul.f32 -1.442695, %v1967_v23 }
 0xa54   : > { %2886 = vpow2.f32 %v2171_v44 }
 0xa55   : > { %2888 = vpow2.f32 %v2172_v26 }
 0xa56   : > { %2890 = vpow2.f32 %v2173_v24 }
 0xa57   : > { %2892 = vpow2.f32 %v2174_v27 }
 0xa5e   : > { %v2887_v51 = vpop.eup %2886 }
 0xa5f   : > { %v2889_v52 = vpop.eup %2888  ;;  %v1980_v28 = vadd.f32 1.0, %v2887_v51 }
 0xa60   : > { %v2891_v25 = vpop.eup %2890  ;;  %v1981_v29 = vadd.f32 1.0, %v2889_v52 }
 0xa61   : > { %v2893_v30 = vpop.eup %2892  ;;  %v1982_v31 = vadd.f32 1.0, %v2891_v25  ;;  %2894 = vrcp.f32 %v1980_v28 }
 0xa62   : > { %v1983_v35 = vadd.f32 1.0, %v2893_v30  ;;  %2896 = vrcp.f32 %v1981_v29 }
 0xa63   : > { %2898 = vrcp.f32 %v1982_v31 }
 0xa64   : > { %2900 = vrcp.f32 %v1983_v35 }
 0xa6b   : > { %v2895_v42 = vpop.eup %2894 }
 0xa6c   : > { %v2897_v33 = vpop.eup %2896  ;;  %v1992_v43 = vadd.f32 %v2895_v42, %v3465_v50  ;;  %v2905_v50 = vld [vmem:[%s3137_s14 + $0x18] sm:$0xff] }
 0xa6d   : > { %v2899_v45 = vpop.eup %2898  ;;  %v1993_v46 = vadd.f32 %v2897_v33, %v3468_v56 }
 0xa6e   : > { %v2901_v49 = vpop.eup %2900  ;;  %v1994_v1 = vadd.f32 %v2899_v45, %v3473_v32  ;;  %v1996_v57 = vmul.f32 %v2902_v2, %v1992_v43 }
 0xa6f   : > { %v1995_v61 = vadd.f32 %v2901_v49, %v3476_v17  ;;  %v1997_v3 = vmul.f32 %v2903_v0, %v1993_v46 }
 0xa70   : > { %v1998_v16 = vmul.f32 %v2904_v6, %v1994_v1  ;;  %2000 = vst [vmem:[%s259_s13] sm:$0xff] %v1996_v57 }
 0xa71   : > { %v1999_v56 = vmul.f32 %v2905_v50, %v1995_v61  ;;  %2001 = vst [vmem:[%s259_s13 + $0x8] sm:$0xff] %v1997_v3 }
 0xa72   : > { %2002 = vst [vmem:[%s259_s13 + $0x10] sm:$0xff] %v1998_v16 }
 0xa73   : > { %2003 = vst [vmem:[%s259_s13 + $0x18] sm:$0xff] %v1999_v56 }
 0xa74   : > { %2947 = shalt.err (!%p2944_p7)
}
 0xa75   : > { %s2948_s14 = scalar_lea.hbm %s3513_s18, 512  ;;  %s2952_s9 = scalar_lea.hbm %s3565_s6, 1024 }
 0xa76   : > { %p2949_p8 = scmp.ne.s32.totalorder %s3513_s18, %s2948_s14  ;;  %p2953_p1 = scmp.lt.u32.totalorder %s3513_s18, %s3565_s6 }
 0xa77   : > { %p2954_p0 = scmp.lt.u32.totalorder %s2952_s9, %s2948_s14  ;;  %p2956_p6 = scmp.lt.u32.totalorder %s2948_s14, %s3513_s18 }
 0xa78   : > { %p2950_p11 = pnand %p2949_p8, %p3576_p9 }
 0xa79   : > { %p2955_p5 = por %p2954_p0, %p2953_p1 }
 0xa7a   : > { %p2951_p13 = pneg %p2950_p11 }
 0xa7b   : > { %p2957_p10 = por %p2956_p6, %p2955_p5 }
 0xa7d   : > { %p2958_p12 = pnand %p2957_p10, %p2951_p13 }
 0xa7f   : > { %2961 = shalt.err (!%p2958_p12)
}
 0xa80   : > { %s3010_s13 = smov 128   ;;  %s3011_s16 = smov 8  }
 0xa81   : > { %2714 = dma.vmem_to_hbm [thread:$0]  (%p3576_p9), %s3515_s15, 512, %s3513_s18, %s3518_s25, %s3010_s13, %s3010_s13, %s3011_s16  }
 0xa82 PF: > { %p2726_p2 = scmp.ge.s32.totalorder %s3000_s24, 2  ;;  %s2033_s17 = sand.u32 1, %s2988_s21  }
 0xa83   : > { %p3577_p3 = scmp.ne.s32.totalorder %s3570_s8, 0  ;;  %s2034_s19 = scalar_lea.sflag [#allocation4], %s2033_s17 }
 0xa85   : > { %p2721_p4 = pnand %p2726_p2, %p3577_p3 }
 0xa87   : > { %2983 = dma.done.wait (!%p2721_p4), %s2034_s19, 512  }
 0xa88   : > { %2985 = vsyncadd (!%p2721_p4), %s2034_s19, 4294966784  ;;  %p17_p7 = scmp.ge.s32.totalorder %s3072_s27, 4   ;;  %s3578_s21 = smov %s2992_s22 }
 0xa89   : > { %s3579_s22 = smov %s2996_s23  ;;  %s3580_s23 = smov %s3083_s30 }
 0xa8a   : > { %s3581_s24 = smov %s3072_s27  ;;  %19 = sbr.rel (!%p17_p7) target bundleno = 4 (0x4), region = 84 }
 0xa91   :  { %2039 = vsyncpa [#allocation3], 1 }
 0xa92   :  { %2041 = vsyncpa [#allocation3 + $0x1], 1 }
 0xa93   :  { %2042 = vsyncpa [#allocation4], 1 }
 0xa94   :  { %2044 = vsyncpa [#allocation4 + $0x1], 1 }

</bundles_post_ra>
